<compile_context>
chip_gen: v5e
topology: v5e:2x2
jax: 0.10.0
libtpu: 0.0.40
codegen_flags: <defaults>
</compile_context>

<pallas_src>
import jax
import jax.numpy as jnp
from jax import lax
from jax.experimental import pallas as pl
from jax.experimental.pallas import tpu as pltpu

# ------------------------- model sizes (small, synthetic) -------------------------
B = 2                         # batch
C_IN = 3                      # image channels
IMG = 16                      # spatial size
PATCH = 4                     # patch size
L = (IMG // PATCH) ** 2       # 16 tokens
D = 32                        # embedding dim
DI = 64                       # inner (expanded) dim
N = 8                         # SSM state dim
SNR_HIDDEN = 16               # hidden width of SNR-conditioning MLP
BL = B * L                    # 32 tokens total (batch folded into rows)
CPP = C_IN * PATCH * PATCH    # 48 features per patch
LANES = 128
DI2 = B * DI                  # 128 : batch-in-lane width for the scan
D2 = B * D                    # 64  : batch-in-lane width of the output

# ----------------------- packed weight-slab row offsets (x8 aligned) -----------------
R_WEMB = 0            # [128, D]   patch-embed weight, K zero-padded 48 -> 128
R_WX = 128            # [D, DI]
R_WZ = 160            # [D, DI]
R_WDT = 192           # [DI, DI]
R_WBCT = 256          # [2N, DI]   concat(wB, wC).T  (transposed B/C projection)
R_WOBD = 272          # [2*DI, 2*D] block-diagonal output projection
R_ATIL = 400          # [N, 2*DI]  A tiled twice along lanes
R_VEC = 408           # row 408: b_emb, 409: bdt, 410: Dp tiled
SLAB_ROWS = 416


# ------------------------------ in-kernel helpers -----------------------------------
def _silu(v):
    # v * sigmoid(v) with sigmoid(v) = 0.5*(1 + tanh(v/2)) : one EUP op per element.
    return 0.5 * v * (1.0 + jnp.tanh(0.5 * v))


def _softplus(v):
    # numerically stable log(1 + exp(v))
    return jnp.maximum(v, 0.0) + jnp.log(1.0 + jnp.exp(-jnp.abs(v)))


# ------------------------------- Pallas kernel ---------------------------------------
def mamba_encoder_kernel(pat_ref, w_ref, scale_ref, o_ref, da_scr, dbx_scr, hist_scr):
    f32 = jnp.float32

    # ---- static views into the packed weight slab (single DMA'd input) ----
    w_emb = w_ref[R_WEMB:R_WEMB + LANES, 0:D]        # [128, 32] (rows >= CPP are zero)
    wx = w_ref[R_WX:R_WX + D, 0:DI]                  # [32, 64]
    wz = w_ref[R_WZ:R_WZ + D, 0:DI]                  # [32, 64]
    wdt = w_ref[R_WDT:R_WDT + DI, 0:DI]              # [64, 64]
    wbc_t = w_ref[R_WBCT:R_WBCT + 2 * N, 0:DI]       # [16, 64]
    wo_bd = w_ref[R_WOBD:R_WOBD + DI2, 0:D2]         # [128, 64] block-diagonal
    a_til = w_ref[R_ATIL:R_ATIL + N, :]              # [8, 128]  A tiled per lane-half
    b_emb = w_ref[R_VEC:R_VEC + 1, 0:D]              # [1, 32]
    bdt = w_ref[R_VEC + 1:R_VEC + 2, 0:DI]           # [1, 64]
    dp2 = w_ref[R_VEC + 2:R_VEC + 3, :]              # [1, 128] Dp tiled per lane-half

    # ---- phase 1: dense projections, batch folded into matmul rows ([BL, *]) ----
    x = jnp.dot(pat_ref[...], w_emb, preferred_element_type=f32) + b_emb        # [32, 32]
    xi = _silu(jnp.dot(x, wx, preferred_element_type=f32))                      # [32, 64]
    z = jnp.dot(x, wz, preferred_element_type=f32)                              # [32, 64]
    dt = _softplus(jnp.dot(xi, wdt, preferred_element_type=f32) + bdt)          # [32, 64]
    # B/C projections produced transposed ([2N, BL]) so the SSM state dim lands
    # in sublanes, which is what the batched scan-slab build wants.
    bct = lax.dot_general(wbc_t, xi, dimension_numbers=(((1,), (1,)), ((), ())),
                          preferred_element_type=f32)                           # [16, 32]
    bT = bct[:N, :]                                                             # [8, 32]
    cT = bct[N:, :]                                                             # [8, 32]

    # ---- phase 2: pack the batch into the lane dimension ([L, 2*DI] = [16, 128]) ----
    xiP = jnp.concatenate([xi[:L], xi[L:]], axis=1)                             # [16, 128]
    dtP = jnp.concatenate([dt[:L], dt[L:]], axis=1)                             # [16, 128]
    zP = jnp.concatenate([z[:L], z[L:]], axis=1)                                # [16, 128]
    xP = jnp.concatenate([x[:L], x[L:]], axis=1)                                # [16, 64]
    dxvP = dtP * xiP                                                            # dt * xi
    dpxiP = xiP * dp2                                                           # D skip term

    # ---- phase 3: batched precompute of the scan operands into VMEM scratch ----
    # Rows [t*N : (t+1)*N] of da_scr / dbx_scr hold the [N, 2*DI] tile of token t.
    # exp() and the B outer-product run here at full-vreg rate, OFF the serial chain.
    for t in range(L):
        r0 = t * N
        dt_rows = jnp.broadcast_to(dtP[t:t + 1, :], (N, DI2))                   # [8, 128]
        dxv_rows = jnp.broadcast_to(dxvP[t:t + 1, :], (N, DI2))                 # [8, 128]
        b_t = jnp.concatenate(
            [jnp.broadcast_to(bT[:, t:t + 1], (N, DI)),
             jnp.broadcast_to(bT[:, L + t:L + t + 1], (N, DI))], axis=1)        # [8, 128]
        da_scr[r0:r0 + N, :] = jnp.exp(dt_rows * a_til)
        dbx_scr[r0:r0 + N, :] = b_t * dxv_rows

    # ---- phase 4: serial selective scan — 16 unrolled steps on full [8,128] vregs ---
    # Per-step critical path: one VPU multiply-add on the register-resident state h.
    h = jnp.zeros((N, DI2), f32)
    for t in range(L):
        r0 = t * N
        h = da_scr[r0:r0 + N, :] * h + dbx_scr[r0:r0 + N, :]
        hist_scr[r0:r0 + N, :] = h                                              # aligned vst

    # ---- phase 5: batched C-contraction, gate, output projection, residual ----
    y_rows = []
    for t in range(L):
        r0 = t * N
        c_t = jnp.concatenate(
            [jnp.broadcast_to(cT[:, t:t + 1], (N, DI)),
             jnp.broadcast_to(cT[:, L + t:L + t + 1], (N, DI))], axis=1)        # [8, 128]
        y_rows.append(jnp.sum(c_t * hist_scr[r0:r0 + N, :], axis=0, keepdims=True))
    yP = jnp.concatenate(y_rows, axis=0) + dpxiP                                # [16, 128]
    gatedP = yP * _silu(zP)                                                     # [16, 128]
    outP = jnp.dot(gatedP, wo_bd, preferred_element_type=f32)                   # [16, 64]
    o_ref[...] = (xP + outP * scale_ref[...]).astype(o_ref.dtype)
    # TODO(synk): the real MobileMamba block also has a depthwise causal conv1d on the
    # sequence before the SSM; omitted in this synthetic encoder.


# ------------------------------- pallas_call wrapper ---------------------------------
_pallas_forward = pl.pallas_call(
    mamba_encoder_kernel,
    out_shape=jax.ShapeDtypeStruct((L, D2), jnp.float32),
    grid=(1,),
    in_specs=[
        pl.BlockSpec((BL, LANES), lambda i: (0, 0)),          # zero-padded patches
        pl.BlockSpec((SLAB_ROWS, LANES), lambda i: (0, 0)),   # packed weight slab
        pl.BlockSpec((1, D2), lambda i: (0, 0)),              # SNR scale (tiled x2)
    ],
    out_specs=pl.BlockSpec((L, D2), lambda i: (0, 0)),
    scratch_shapes=[
        pltpu.VMEM((L * N, DI2), jnp.float32),                # dA slab
        pltpu.VMEM((L * N, DI2), jnp.float32),                # dB*x slab
        pltpu.VMEM((L * N, DI2), jnp.float32),                # h history
    ],
)


# ------------------------------- glue (plain JAX) ------------------------------------
def extract_patches(img):  # img: [B, C, H, W] (NCHW, like PyTorch)
    Bn, Cn, H, W = img.shape
    x = jnp.transpose(img, (0, 2, 3, 1))                                   # NHWC
    x = x.reshape(Bn, H // PATCH, PATCH, W // PATCH, PATCH, Cn)
    x = jnp.transpose(x, (0, 1, 3, 2, 4, 5))                               # B,h,w,p,p,C
    return x.reshape(Bn, (H // PATCH) * (W // PATCH), PATCH * PATCH * Cn)


def snr_scale_fn(p, SNR):
    s = jnp.float32(SNR) / 20.0
    h1 = jax.nn.relu(s * p["w1"] + p["b1"])            # [1, SNR_HIDDEN]
    return jax.nn.sigmoid(h1 @ p["w2"] + p["b2"])      # [1, D]


def pack_weights(p):
    """Pack every static weight/bias once into a single lane-dense [416,128] slab."""
    W = jnp.zeros((SLAB_ROWS, LANES), jnp.float32)
    W = W.at[R_WEMB:R_WEMB + CPP, 0:D].set(p["w_emb"])
    W = W.at[R_WX:R_WX + D, 0:DI].set(p["wx"])
    W = W.at[R_WZ:R_WZ + D, 0:DI].set(p["wz"])
    W = W.at[R_WDT:R_WDT + DI, 0:DI].set(p["wdt"])
    wbc_t = jnp.concatenate([p["wB"], p["wC"]], axis=1).T                  # [2N, DI]
    W = W.at[R_WBCT:R_WBCT + 2 * N, 0:DI].set(wbc_t)
    W = W.at[R_WOBD:R_WOBD + DI, 0:D].set(p["wo"])                         # batch-0 block
    W = W.at[R_WOBD + DI:R_WOBD + 2 * DI, D:2 * D].set(p["wo"])            # batch-1 block
    W = W.at[R_ATIL:R_ATIL + N, :].set(jnp.concatenate([p["A_T"], p["A_T"]], axis=1))
    W = W.at[R_VEC, 0:D].set(p["b_emb"][0])
    W = W.at[R_VEC + 1, 0:DI].set(p["bdt"][0])
    W = W.at[R_VEC + 2, :].set(jnp.concatenate([p["Dp"][0], p["Dp"][0]], axis=0))
    return W


def init_params(key):
    ks = jax.random.split(key, 9)
    sc = 0.1
    p = {}
    p["w_emb"] = sc * jax.random.normal(ks[0], (CPP, D), jnp.float32)
    p["b_emb"] = jnp.zeros((1, D), jnp.float32)
    p["wx"] = sc * jax.random.normal(ks[1], (D, DI), jnp.float32)
    p["wz"] = sc * jax.random.normal(ks[2], (D, DI), jnp.float32)
    p["wdt"] = sc * jax.random.normal(ks[3], (DI, DI), jnp.float32)
    p["bdt"] = jnp.full((1, DI), -1.0, jnp.float32)
    p["wB"] = sc * jax.random.normal(ks[4], (DI, N), jnp.float32)
    p["wC"] = sc * jax.random.normal(ks[5], (DI, N), jnp.float32)
    p["A_T"] = -jnp.broadcast_to(
        jnp.arange(1, N + 1, dtype=jnp.float32)[:, None], (N, DI)
    ) + jnp.zeros((N, DI), jnp.float32)
    p["Dp"] = jnp.ones((1, DI), jnp.float32)
    p["wo"] = sc * jax.random.normal(ks[6], (DI, D), jnp.float32)
    p["w1"] = sc * jax.random.normal(ks[7], (1, SNR_HIDDEN), jnp.float32)
    p["b1"] = jnp.zeros((SNR_HIDDEN,), jnp.float32)
    p["w2"] = sc * jax.random.normal(ks[8], (SNR_HIDDEN, D), jnp.float32)
    p["b2"] = jnp.zeros((D,), jnp.float32)
    return p


def mamba_encoder_forward(params, weight_slab, input_image, SNR):
    """Equivalent of Mamba_encoder.forward(input_image, SNR) -> feature [B, L, D]."""
    patches = extract_patches(input_image).reshape(BL, CPP)
    patches_p = jnp.zeros((BL, LANES), jnp.float32).at[:, :CPP].set(patches)
    scale = snr_scale_fn(params, SNR)                              # [1, D] (tiny, XLA)
    scale2 = jnp.concatenate([scale, scale], axis=1)               # [1, 2*D] lane-packed
    out = _pallas_forward(patches_p, weight_slab, scale2)          # [L, 2*D]
    return out.reshape(L, B, D).transpose(1, 0, 2)                 # [B, L, D]


# ------------------------------- pure-JAX reference ----------------------------------
def reference_forward(p, img, SNR):
    patches = extract_patches(img)
    x = patches @ p["w_emb"] + p["b_emb"]              # [B, L, D]
    scale = snr_scale_fn(p, SNR)                       # [1, D]

    def one(xb):                                       # xb: [L, D]
        xi = xb @ p["wx"]
        z = xb @ p["wz"]
        xi = xi * jax.nn.sigmoid(xi)
        dt = jax.nn.softplus(xi @ p["wdt"] + p["bdt"])
        Bm = xi @ p["wB"]
        Cm = xi @ p["wC"]
        A = p["A_T"]                                   # [N, DI]

        def step(h, t):
            dA = jnp.exp(dt[t][None, :] * A)
            dBx = Bm[t][:, None] * (dt[t] * xi[t])[None, :]
            h = dA * h + dBx
            y = Cm[t] @ h + p["Dp"][0] * xi[t]
            return h, y

        _, ys = lax.scan(step, jnp.zeros((N, DI), jnp.float32), jnp.arange(L))
        gated = ys * (z * jax.nn.sigmoid(z))
        out = gated @ p["wo"]
        return xb + out * scale

    return jax.vmap(one)(x)


# ---------------------------------------- main ---------------------------------------
if __name__ == "__main__":
    key = jax.random.PRNGKey(0)
    pkey, ikey = jax.random.split(key)
    params = init_params(pkey)
    weight_slab = pack_weights(params)                 # packed ONCE, outside the forward
    input_image = jax.random.normal(ikey, (B, C_IN, IMG, IMG), jnp.float32)
    SNR = 10

    fwd = jax.jit(mamba_encoder_forward)
    feature = fwd(params, weight_slab, input_image, SNR)
    feature = jax.block_until_ready(feature)

    assert feature.shape == (B, L, D), feature.shape
    assert bool(jnp.all(jnp.isfinite(feature)))

    ref = reference_forward(params, input_image, SNR)
    err = float(jnp.max(jnp.abs(feature - ref)))
    assert err < 1e-2, f"Pallas vs reference mismatch: max abs err = {err}"

    print("KERNEL_OK")
</pallas_src>

<mosaic_0001>
module attributes {stable_mosaic.version = 11 : i64} {
  func.func @mamba_encoder_kernel(%arg0: i32, %arg1: memref<32x128xf32, #tpu.memory_space<vmem>>, %arg2: memref<416x128xf32, #tpu.memory_space<vmem>>, %arg3: memref<1x64xf32, #tpu.memory_space<vmem>>, %arg4: memref<16x64xf32, #tpu.memory_space<vmem>>, %arg5: memref<128x128xf32, #tpu.memory_space<vmem>>, %arg6: memref<128x128xf32, #tpu.memory_space<vmem>>, %arg7: memref<128x128xf32, #tpu.memory_space<vmem>>) attributes {dimension_semantics = [#tpu.dimension_semantics<arbitrary>], iteration_bounds = array<i64: 1>, scalar_prefetch = 0 : i64, scratch_operands = 3 : i64, tpu.core_type = #tpu.core_type<tc>, window_params = [{pipeline_mode = #tpu.pipeline_mode<synchronous>, transform_indices = @transform_0, window_bounds = array<i64: 32, 128>}, {pipeline_mode = #tpu.pipeline_mode<synchronous>, transform_indices = @transform_1, window_bounds = array<i64: 416, 128>}, {pipeline_mode = #tpu.pipeline_mode<synchronous>, transform_indices = @transform_2, window_bounds = array<i64: 1, 64>}, {pipeline_mode = #tpu.pipeline_mode<synchronous>, transform_indices = @transform_3, window_bounds = array<i64: 16, 64>}]} {
    %c0 = arith.constant 0 : index
    %c0_0 = arith.constant 0 : index
    %0 = vector.load %arg2[%c0, %c0_0] : memref<416x128xf32, #tpu.memory_space<vmem>>, vector<128x32xf32>
    %c128 = arith.constant 128 : index
    %c0_1 = arith.constant 0 : index
    %1 = vector.load %arg2[%c128, %c0_1] : memref<416x128xf32, #tpu.memory_space<vmem>>, vector<32x64xf32>
    %c160 = arith.constant 160 : index
    %c0_2 = arith.constant 0 : index
    %2 = vector.load %arg2[%c160, %c0_2] : memref<416x128xf32, #tpu.memory_space<vmem>>, vector<32x64xf32>
    %c192 = arith.constant 192 : index
    %c0_3 = arith.constant 0 : index
    %3 = vector.load %arg2[%c192, %c0_3] : memref<416x128xf32, #tpu.memory_space<vmem>>, vector<64x64xf32>
    %c256 = arith.constant 256 : index
    %c0_4 = arith.constant 0 : index
    %4 = vector.load %arg2[%c256, %c0_4] : memref<416x128xf32, #tpu.memory_space<vmem>>, vector<16x64xf32>
    %c272 = arith.constant 272 : index
    %c0_5 = arith.constant 0 : index
    %5 = vector.load %arg2[%c272, %c0_5] : memref<416x128xf32, #tpu.memory_space<vmem>>, vector<128x64xf32>
    %c400 = arith.constant 400 : index
    %c0_6 = arith.constant 0 : index
    %6 = vector.load %arg2[%c400, %c0_6] : memref<416x128xf32, #tpu.memory_space<vmem>>, vector<8x128xf32>
    %c408 = arith.constant 408 : index
    %c0_7 = arith.constant 0 : index
    %7 = vector.load %arg2[%c408, %c0_7] : memref<416x128xf32, #tpu.memory_space<vmem>>, vector<1x32xf32>
    %c409 = arith.constant 409 : index
    %c0_8 = arith.constant 0 : index
    %8 = vector.load %arg2[%c409, %c0_8] : memref<416x128xf32, #tpu.memory_space<vmem>>, vector<1x64xf32>
    %c410 = arith.constant 410 : index
    %c0_9 = arith.constant 0 : index
    %9 = vector.load %arg2[%c410, %c0_9] : memref<416x128xf32, #tpu.memory_space<vmem>>, vector<1x128xf32>
    %c0_10 = arith.constant 0 : index
    %c0_11 = arith.constant 0 : index
    %10 = vector.load %arg1[%c0_10, %c0_11] : memref<32x128xf32, #tpu.memory_space<vmem>>, vector<32x128xf32>
    %cst = arith.constant dense<0.000000e+00> : vector<32x32xf32>
    %11 = tpu.matmul %10, %0, %cst {dimension_numbers = #tpu.dot_dimension_numbers<[1], [0], [0], [1], [0, 0, 1, 1], [], []>} : vector<32x128xf32>, vector<128x32xf32>, vector<32x32xf32> -> vector<32x32xf32>
    %12 = vector.broadcast %7 : vector<1x32xf32> to vector<32x32xf32>
    %13 = arith.addf %11, %12 : vector<32x32xf32>
    %cst_12 = arith.constant dense<0.000000e+00> : vector<32x64xf32>
    %14 = tpu.matmul %13, %1, %cst_12 {dimension_numbers = #tpu.dot_dimension_numbers<[1], [0], [0], [1], [0, 0, 1, 1], [], []>} : vector<32x32xf32>, vector<32x64xf32>, vector<32x64xf32> -> vector<32x64xf32>
    %cst_13 = arith.constant 5.000000e-01 : f32
    %15 = vector.broadcast %cst_13 : f32 to vector<32x64xf32>
    %16 = arith.mulf %15, %14 : vector<32x64xf32>
    %cst_14 = arith.constant 5.000000e-01 : f32
    %17 = vector.broadcast %cst_14 : f32 to vector<32x64xf32>
    %18 = arith.mulf %17, %14 : vector<32x64xf32>
    %19 = math.tanh %18 : vector<32x64xf32>
    %cst_15 = arith.constant 1.000000e+00 : f32
    %20 = vector.broadcast %cst_15 : f32 to vector<32x64xf32>
    %21 = arith.addf %20, %19 : vector<32x64xf32>
    %22 = arith.mulf %16, %21 : vector<32x64xf32>
    %cst_16 = arith.constant dense<0.000000e+00> : vector<32x64xf32>
    %23 = tpu.matmul %13, %2, %cst_16 {dimension_numbers = #tpu.dot_dimension_numbers<[1], [0], [0], [1], [0, 0, 1, 1], [], []>} : vector<32x32xf32>, vector<32x64xf32>, vector<32x64xf32> -> vector<32x64xf32>
    %cst_17 = arith.constant dense<0.000000e+00> : vector<32x64xf32>
    %24 = tpu.matmul %22, %3, %cst_17 {dimension_numbers = #tpu.dot_dimension_numbers<[1], [0], [0], [1], [0, 0, 1, 1], [], []>} : vector<32x64xf32>, vector<64x64xf32>, vector<32x64xf32> -> vector<32x64xf32>
    %25 = vector.broadcast %8 : vector<1x64xf32> to vector<32x64xf32>
    %26 = arith.addf %24, %25 : vector<32x64xf32>
    %cst_18 = arith.constant 0.000000e+00 : f32
    %27 = vector.broadcast %cst_18 : f32 to vector<32x64xf32>
    %28 = arith.maximumf %26, %27 : vector<32x64xf32>
    %29 = math.absf %26 : vector<32x64xf32>
    %cst_19 = arith.constant 0.000000e+00 : f32
    %30 = vector.broadcast %cst_19 : f32 to vector<32x64xf32>
    %31 = arith.subf %30, %29 : vector<32x64xf32>
    %32 = math.exp %31 : vector<32x64xf32>
    %cst_20 = arith.constant 1.000000e+00 : f32
    %33 = vector.broadcast %cst_20 : f32 to vector<32x64xf32>
    %34 = arith.addf %33, %32 : vector<32x64xf32>
    %35 = math.log %34 : vector<32x64xf32>
    %36 = arith.addf %28, %35 : vector<32x64xf32>
    %cst_21 = arith.constant dense<0.000000e+00> : vector<16x32xf32>
    %37 = tpu.matmul %4, %22, %cst_21 {dimension_numbers = #tpu.dot_dimension_numbers<[1], [1], [0], [0], [0, 0, 1, 0], [], []>} : vector<16x64xf32>, vector<32x64xf32>, vector<16x32xf32> -> vector<16x32xf32>
    %38 = vector.extract_strided_slice %37 {offsets = [0, 0], sizes = [8, 32], strides = [1, 1]} : vector<16x32xf32> to vector<8x32xf32>
    %39 = vector.extract_strided_slice %37 {offsets = [8, 0], sizes = [8, 32], strides = [1, 1]} : vector<16x32xf32> to vector<8x32xf32>
    %40 = vector.extract_strided_slice %22 {offsets = [0, 0], sizes = [16, 64], strides = [1, 1]} : vector<32x64xf32> to vector<16x64xf32>
    %41 = vector.extract_strided_slice %22 {offsets = [16, 0], sizes = [16, 64], strides = [1, 1]} : vector<32x64xf32> to vector<16x64xf32>
    %42 = tpu.concatenate %40, %41 in 1 : vector<16x64xf32>, vector<16x64xf32> -> vector<16x128xf32>
    %43 = vector.extract_strided_slice %36 {offsets = [0, 0], sizes = [16, 64], strides = [1, 1]} : vector<32x64xf32> to vector<16x64xf32>
    %44 = vector.extract_strided_slice %36 {offsets = [16, 0], sizes = [16, 64], strides = [1, 1]} : vector<32x64xf32> to vector<16x64xf32>
    %45 = tpu.concatenate %43, %44 in 1 : vector<16x64xf32>, vector<16x64xf32> -> vector<16x128xf32>
    %46 = vector.extract_strided_slice %23 {offsets = [0, 0], sizes = [16, 64], strides = [1, 1]} : vector<32x64xf32> to vector<16x64xf32>
    %47 = vector.extract_strided_slice %23 {offsets = [16, 0], sizes = [16, 64], strides = [1, 1]} : vector<32x64xf32> to vector<16x64xf32>
    %48 = tpu.concatenate %46, %47 in 1 : vector<16x64xf32>, vector<16x64xf32> -> vector<16x128xf32>
    %49 = vector.extract_strided_slice %13 {offsets = [0, 0], sizes = [16, 32], strides = [1, 1]} : vector<32x32xf32> to vector<16x32xf32>
    %50 = vector.extract_strided_slice %13 {offsets = [16, 0], sizes = [16, 32], strides = [1, 1]} : vector<32x32xf32> to vector<16x32xf32>
    %51 = tpu.concatenate %49, %50 in 1 : vector<16x32xf32>, vector<16x32xf32> -> vector<16x64xf32>
    %52 = arith.mulf %45, %42 : vector<16x128xf32>
    %53 = vector.broadcast %9 : vector<1x128xf32> to vector<16x128xf32>
    %54 = arith.mulf %42, %53 : vector<16x128xf32>
    %55 = vector.extract_strided_slice %45 {offsets = [0, 0], sizes = [1, 128], strides = [1, 1]} : vector<16x128xf32> to vector<1x128xf32>
    %56 = vector.shape_cast %55 : vector<1x128xf32> to vector<1x128xf32>
    %57 = vector.broadcast %56 : vector<1x128xf32> to vector<8x128xf32>
    %58 = vector.extract_strided_slice %52 {offsets = [0, 0], sizes = [1, 128], strides = [1, 1]} : vector<16x128xf32> to vector<1x128xf32>
    %59 = vector.shape_cast %58 : vector<1x128xf32> to vector<1x128xf32>
    %60 = vector.broadcast %59 : vector<1x128xf32> to vector<8x128xf32>
    %61 = vector.extract_strided_slice %38 {offsets = [0, 0], sizes = [8, 1], strides = [1, 1]} : vector<8x32xf32> to vector<8x1xf32>
    %62 = vector.shape_cast %61 : vector<8x1xf32> to vector<8x1xf32>
    %63 = vector.broadcast %62 : vector<8x1xf32> to vector<8x64xf32>
    %64 = vector.extract_strided_slice %38 {offsets = [0, 16], sizes = [8, 1], strides = [1, 1]} : vector<8x32xf32> to vector<8x1xf32>
    %65 = vector.shape_cast %64 : vector<8x1xf32> to vector<8x1xf32>
    %66 = vector.broadcast %65 : vector<8x1xf32> to vector<8x64xf32>
    %67 = tpu.concatenate %63, %66 in 1 : vector<8x64xf32>, vector<8x64xf32> -> vector<8x128xf32>
    %68 = arith.mulf %57, %6 : vector<8x128xf32>
    %69 = math.exp %68 : vector<8x128xf32>
    %c0_22 = arith.constant 0 : index
    %c0_23 = arith.constant 0 : index
    %70 = vector.load %arg5[%c0_22, %c0_23] : memref<128x128xf32, #tpu.memory_space<vmem>>, vector<8x128xf32>
    tpu.vector_store %arg5[%c0_22, %c0_23], %69 {strides = array<i32>} : memref<128x128xf32, #tpu.memory_space<vmem>>, vector<8x128xf32>,
    %71 = arith.mulf %67, %60 : vector<8x128xf32>
    %c0_24 = arith.constant 0 : index
    %c0_25 = arith.constant 0 : index
    %72 = vector.load %arg6[%c0_24, %c0_25] : memref<128x128xf32, #tpu.memory_space<vmem>>, vector<8x128xf32>
    tpu.vector_store %arg6[%c0_24, %c0_25], %71 {strides = array<i32>} : memref<128x128xf32, #tpu.memory_space<vmem>>, vector<8x128xf32>,
    %73 = vector.extract_strided_slice %45 {offsets = [1, 0], sizes = [1, 128], strides = [1, 1]} : vector<16x128xf32> to vector<1x128xf32>
    %74 = vector.shape_cast %73 : vector<1x128xf32> to vector<1x128xf32>
    %75 = vector.broadcast %74 : vector<1x128xf32> to vector<8x128xf32>
    %76 = vector.extract_strided_slice %52 {offsets = [1, 0], sizes = [1, 128], strides = [1, 1]} : vector<16x128xf32> to vector<1x128xf32>
    %77 = vector.shape_cast %76 : vector<1x128xf32> to vector<1x128xf32>
    %78 = vector.broadcast %77 : vector<1x128xf32> to vector<8x128xf32>
    %79 = vector.extract_strided_slice %38 {offsets = [0, 1], sizes = [8, 1], strides = [1, 1]} : vector<8x32xf32> to vector<8x1xf32>
    %80 = vector.shape_cast %79 : vector<8x1xf32> to vector<8x1xf32>
    %81 = vector.broadcast %80 : vector<8x1xf32> to vector<8x64xf32>
    %82 = vector.extract_strided_slice %38 {offsets = [0, 17], sizes = [8, 1], strides = [1, 1]} : vector<8x32xf32> to vector<8x1xf32>
    %83 = vector.shape_cast %82 : vector<8x1xf32> to vector<8x1xf32>
    %84 = vector.broadcast %83 : vector<8x1xf32> to vector<8x64xf32>
    %85 = tpu.concatenate %81, %84 in 1 : vector<8x64xf32>, vector<8x64xf32> -> vector<8x128xf32>
    %86 = arith.mulf %75, %6 : vector<8x128xf32>
    %87 = math.exp %86 : vector<8x128xf32>
    %c8 = arith.constant 8 : index
    %c0_26 = arith.constant 0 : index
    %88 = vector.load %arg5[%c8, %c0_26] : memref<128x128xf32, #tpu.memory_space<vmem>>, vector<8x128xf32>
    tpu.vector_store %arg5[%c8, %c0_26], %87 {strides = array<i32>} : memref<128x128xf32, #tpu.memory_space<vmem>>, vector<8x128xf32>,
    %89 = arith.mulf %85, %78 : vector<8x128xf32>
    %c8_27 = arith.constant 8 : index
    %c0_28 = arith.constant 0 : index
    %90 = vector.load %arg6[%c8_27, %c0_28] : memref<128x128xf32, #tpu.memory_space<vmem>>, vector<8x128xf32>
    tpu.vector_store %arg6[%c8_27, %c0_28], %89 {strides = array<i32>} : memref<128x128xf32, #tpu.memory_space<vmem>>, vector<8x128xf32>,
    %91 = vector.extract_strided_slice %45 {offsets = [2, 0], sizes = [1, 128], strides = [1, 1]} : vector<16x128xf32> to vector<1x128xf32>
    %92 = vector.shape_cast %91 : vector<1x128xf32> to vector<1x128xf32>
    %93 = vector.broadcast %92 : vector<1x128xf32> to vector<8x128xf32>
    %94 = vector.extract_strided_slice %52 {offsets = [2, 0], sizes = [1, 128], strides = [1, 1]} : vector<16x128xf32> to vector<1x128xf32>
    %95 = vector.shape_cast %94 : vector<1x128xf32> to vector<1x128xf32>
    %96 = vector.broadcast %95 : vector<1x128xf32> to vector<8x128xf32>
    %97 = vector.extract_strided_slice %38 {offsets = [0, 2], sizes = [8, 1], strides = [1, 1]} : vector<8x32xf32> to vector<8x1xf32>
    %98 = vector.shape_cast %97 : vector<8x1xf32> to vector<8x1xf32>
    %99 = vector.broadcast %98 : vector<8x1xf32> to vector<8x64xf32>
    %100 = vector.extract_strided_slice %38 {offsets = [0, 18], sizes = [8, 1], strides = [1, 1]} : vector<8x32xf32> to vector<8x1xf32>
    %101 = vector.shape_cast %100 : vector<8x1xf32> to vector<8x1xf32>
    %102 = vector.broadcast %101 : vector<8x1xf32> to vector<8x64xf32>
    %103 = tpu.concatenate %99, %102 in 1 : vector<8x64xf32>, vector<8x64xf32> -> vector<8x128xf32>
    %104 = arith.mulf %93, %6 : vector<8x128xf32>
    %105 = math.exp %104 : vector<8x128xf32>
    %c16 = arith.constant 16 : index
    %c0_29 = arith.constant 0 : index
    %106 = vector.load %arg5[%c16, %c0_29] : memref<128x128xf32, #tpu.memory_space<vmem>>, vector<8x128xf32>
    tpu.vector_store %arg5[%c16, %c0_29], %105 {strides = array<i32>} : memref<128x128xf32, #tpu.memory_space<vmem>>, vector<8x128xf32>,
    %107 = arith.mulf %103, %96 : vector<8x128xf32>
    %c16_30 = arith.constant 16 : index
    %c0_31 = arith.constant 0 : index
    %108 = vector.load %arg6[%c16_30, %c0_31] : memref<128x128xf32, #tpu.memory_space<vmem>>, vector<8x128xf32>
    tpu.vector_store %arg6[%c16_30, %c0_31], %107 {strides = array<i32>} : memref<128x128xf32, #tpu.memory_space<vmem>>, vector<8x128xf32>,
    %109 = vector.extract_strided_slice %45 {offsets = [3, 0], sizes = [1, 128], strides = [1, 1]} : vector<16x128xf32> to vector<1x128xf32>
    %110 = vector.shape_cast %109 : vector<1x128xf32> to vector<1x128xf32>
    %111 = vector.broadcast %110 : vector<1x128xf32> to vector<8x128xf32>
    %112 = vector.extract_strided_slice %52 {offsets = [3, 0], sizes = [1, 128], strides = [1, 1]} : vector<16x128xf32> to vector<1x128xf32>
    %113 = vector.shape_cast %112 : vector<1x128xf32> to vector<1x128xf32>
    %114 = vector.broadcast %113 : vector<1x128xf32> to vector<8x128xf32>
    %115 = vector.extract_strided_slice %38 {offsets = [0, 3], sizes = [8, 1], strides = [1, 1]} : vector<8x32xf32> to vector<8x1xf32>
    %116 = vector.shape_cast %115 : vector<8x1xf32> to vector<8x1xf32>
    %117 = vector.broadcast %116 : vector<8x1xf32> to vector<8x64xf32>
    %118 = vector.extract_strided_slice %38 {offsets = [0, 19], sizes = [8, 1], strides = [1, 1]} : vector<8x32xf32> to vector<8x1xf32>
    %119 = vector.shape_cast %118 : vector<8x1xf32> to vector<8x1xf32>
    %120 = vector.broadcast %119 : vector<8x1xf32> to vector<8x64xf32>
    %121 = tpu.concatenate %117, %120 in 1 : vector<8x64xf32>, vector<8x64xf32> -> vector<8x128xf32>
    %122 = arith.mulf %111, %6 : vector<8x128xf32>
    %123 = math.exp %122 : vector<8x128xf32>
    %c24 = arith.constant 24 : index
    %c0_32 = arith.constant 0 : index
    %124 = vector.load %arg5[%c24, %c0_32] : memref<128x128xf32, #tpu.memory_space<vmem>>, vector<8x128xf32>
    tpu.vector_store %arg5[%c24, %c0_32], %123 {strides = array<i32>} : memref<128x128xf32, #tpu.memory_space<vmem>>, vector<8x128xf32>,
    %125 = arith.mulf %121, %114 : vector<8x128xf32>
    %c24_33 = arith.constant 24 : index
    %c0_34 = arith.constant 0 : index
    %126 = vector.load %arg6[%c24_33, %c0_34] : memref<128x128xf32, #tpu.memory_space<vmem>>, vector<8x128xf32>
    tpu.vector_store %arg6[%c24_33, %c0_34], %125 {strides = array<i32>} : memref<128x128xf32, #tpu.memory_space<vmem>>, vector<8x128xf32>,
    %127 = vector.extract_strided_slice %45 {offsets = [4, 0], sizes = [1, 128], strides = [1, 1]} : vector<16x128xf32> to vector<1x128xf32>
    %128 = vector.shape_cast %127 : vector<1x128xf32> to vector<1x128xf32>
    %129 = vector.broadcast %128 : vector<1x128xf32> to vector<8x128xf32>
    %130 = vector.extract_strided_slice %52 {offsets = [4, 0], sizes = [1, 128], strides = [1, 1]} : vector<16x128xf32> to vector<1x128xf32>
    %131 = vector.shape_cast %130 : vector<1x128xf32> to vector<1x128xf32>
    %132 = vector.broadcast %131 : vector<1x128xf32> to vector<8x128xf32>
    %133 = vector.extract_strided_slice %38 {offsets = [0, 4], sizes = [8, 1], strides = [1, 1]} : vector<8x32xf32> to vector<8x1xf32>
    %134 = vector.shape_cast %133 : vector<8x1xf32> to vector<8x1xf32>
    %135 = vector.broadcast %134 : vector<8x1xf32> to vector<8x64xf32>
    %136 = vector.extract_strided_slice %38 {offsets = [0, 20], sizes = [8, 1], strides = [1, 1]} : vector<8x32xf32> to vector<8x1xf32>
    %137 = vector.shape_cast %136 : vector<8x1xf32> to vector<8x1xf32>
    %138 = vector.broadcast %137 : vector<8x1xf32> to vector<8x64xf32>
    %139 = tpu.concatenate %135, %138 in 1 : vector<8x64xf32>, vector<8x64xf32> -> vector<8x128xf32>
    %140 = arith.mulf %129, %6 : vector<8x128xf32>
    %141 = math.exp %140 : vector<8x128xf32>
    %c32 = arith.constant 32 : index
    %c0_35 = arith.constant 0 : index
    %142 = vector.load %arg5[%c32, %c0_35] : memref<128x128xf32, #tpu.memory_space<vmem>>, vector<8x128xf32>
    tpu.vector_store %arg5[%c32, %c0_35], %141 {strides = array<i32>} : memref<128x128xf32, #tpu.memory_space<vmem>>, vector<8x128xf32>,
    %143 = arith.mulf %139, %132 : vector<8x128xf32>
    %c32_36 = arith.constant 32 : index
    %c0_37 = arith.constant 0 : index
    %144 = vector.load %arg6[%c32_36, %c0_37] : memref<128x128xf32, #tpu.memory_space<vmem>>, vector<8x128xf32>
    tpu.vector_store %arg6[%c32_36, %c0_37], %143 {strides = array<i32>} : memref<128x128xf32, #tpu.memory_space<vmem>>, vector<8x128xf32>,
    %145 = vector.extract_strided_slice %45 {offsets = [5, 0], sizes = [1, 128], strides = [1, 1]} : vector<16x128xf32> to vector<1x128xf32>
    %146 = vector.shape_cast %145 : vector<1x128xf32> to vector<1x128xf32>
    %147 = vector.broadcast %146 : vector<1x128xf32> to vector<8x128xf32>
    %148 = vector.extract_strided_slice %52 {offsets = [5, 0], sizes = [1, 128], strides = [1, 1]} : vector<16x128xf32> to vector<1x128xf32>
    %149 = vector.shape_cast %148 : vector<1x128xf32> to vector<1x128xf32>
    %150 = vector.broadcast %149 : vector<1x128xf32> to vector<8x128xf32>
    %151 = vector.extract_strided_slice %38 {offsets = [0, 5], sizes = [8, 1], strides = [1, 1]} : vector<8x32xf32> to vector<8x1xf32>
    %152 = vector.shape_cast %151 : vector<8x1xf32> to vector<8x1xf32>
    %153 = vector.broadcast %152 : vector<8x1xf32> to vector<8x64xf32>
    %154 = vector.extract_strided_slice %38 {offsets = [0, 21], sizes = [8, 1], strides = [1, 1]} : vector<8x32xf32> to vector<8x1xf32>
    %155 = vector.shape_cast %154 : vector<8x1xf32> to vector<8x1xf32>
    %156 = vector.broadcast %155 : vector<8x1xf32> to vector<8x64xf32>
    %157 = tpu.concatenate %153, %156 in 1 : vector<8x64xf32>, vector<8x64xf32> -> vector<8x128xf32>
    %158 = arith.mulf %147, %6 : vector<8x128xf32>
    %159 = math.exp %158 : vector<8x128xf32>
    %c40 = arith.constant 40 : index
    %c0_38 = arith.constant 0 : index
    %160 = vector.load %arg5[%c40, %c0_38] : memref<128x128xf32, #tpu.memory_space<vmem>>, vector<8x128xf32>
    tpu.vector_store %arg5[%c40, %c0_38], %159 {strides = array<i32>} : memref<128x128xf32, #tpu.memory_space<vmem>>, vector<8x128xf32>,
    %161 = arith.mulf %157, %150 : vector<8x128xf32>
    %c40_39 = arith.constant 40 : index
    %c0_40 = arith.constant 0 : index
    %162 = vector.load %arg6[%c40_39, %c0_40] : memref<128x128xf32, #tpu.memory_space<vmem>>, vector<8x128xf32>
    tpu.vector_store %arg6[%c40_39, %c0_40], %161 {strides = array<i32>} : memref<128x128xf32, #tpu.memory_space<vmem>>, vector<8x128xf32>,
    %163 = vector.extract_strided_slice %45 {offsets = [6, 0], sizes = [1, 128], strides = [1, 1]} : vector<16x128xf32> to vector<1x128xf32>
    %164 = vector.shape_cast %163 : vector<1x128xf32> to vector<1x128xf32>
    %165 = vector.broadcast %164 : vector<1x128xf32> to vector<8x128xf32>
    %166 = vector.extract_strided_slice %52 {offsets = [6, 0], sizes = [1, 128], strides = [1, 1]} : vector<16x128xf32> to vector<1x128xf32>
    %167 = vector.shape_cast %166 : vector<1x128xf32> to vector<1x128xf32>
    %168 = vector.broadcast %167 : vector<1x128xf32> to vector<8x128xf32>
    %169 = vector.extract_strided_slice %38 {offsets = [0, 6], sizes = [8, 1], strides = [1, 1]} : vector<8x32xf32> to vector<8x1xf32>
    %170 = vector.shape_cast %169 : vector<8x1xf32> to vector<8x1xf32>
    %171 = vector.broadcast %170 : vector<8x1xf32> to vector<8x64xf32>
    %172 = vector.extract_strided_slice %38 {offsets = [0, 22], sizes = [8, 1], strides = [1, 1]} : vector<8x32xf32> to vector<8x1xf32>
    %173 = vector.shape_cast %172 : vector<8x1xf32> to vector<8x1xf32>
    %174 = vector.broadcast %173 : vector<8x1xf32> to vector<8x64xf32>
    %175 = tpu.concatenate %171, %174 in 1 : vector<8x64xf32>, vector<8x64xf32> -> vector<8x128xf32>
    %176 = arith.mulf %165, %6 : vector<8x128xf32>
    %177 = math.exp %176 : vector<8x128xf32>
    %c48 = arith.constant 48 : index
    %c0_41 = arith.constant 0 : index
    %178 = vector.load %arg5[%c48, %c0_41] : memref<128x128xf32, #tpu.memory_space<vmem>>, vector<8x128xf32>
    tpu.vector_store %arg5[%c48, %c0_41], %177 {strides = array<i32>} : memref<128x128xf32, #tpu.memory_space<vmem>>, vector<8x128xf32>,
    %179 = arith.mulf %175, %168 : vector<8x128xf32>
    %c48_42 = arith.constant 48 : index
    %c0_43 = arith.constant 0 : index
    %180 = vector.load %arg6[%c48_42, %c0_43] : memref<128x128xf32, #tpu.memory_space<vmem>>, vector<8x128xf32>
    tpu.vector_store %arg6[%c48_42, %c0_43], %179 {strides = array<i32>} : memref<128x128xf32, #tpu.memory_space<vmem>>, vector<8x128xf32>,
    %181 = vector.extract_strided_slice %45 {offsets = [7, 0], sizes = [1, 128], strides = [1, 1]} : vector<16x128xf32> to vector<1x128xf32>
    %182 = vector.shape_cast %181 : vector<1x128xf32> to vector<1x128xf32>
    %183 = vector.broadcast %182 : vector<1x128xf32> to vector<8x128xf32>
    %184 = vector.extract_strided_slice %52 {offsets = [7, 0], sizes = [1, 128], strides = [1, 1]} : vector<16x128xf32> to vector<1x128xf32>
    %185 = vector.shape_cast %184 : vector<1x128xf32> to vector<1x128xf32>
    %186 = vector.broadcast %185 : vector<1x128xf32> to vector<8x128xf32>
    %187 = vector.extract_strided_slice %38 {offsets = [0, 7], sizes = [8, 1], strides = [1, 1]} : vector<8x32xf32> to vector<8x1xf32>
    %188 = vector.shape_cast %187 : vector<8x1xf32> to vector<8x1xf32>
    %189 = vector.broadcast %188 : vector<8x1xf32> to vector<8x64xf32>
    %190 = vector.extract_strided_slice %38 {offsets = [0, 23], sizes = [8, 1], strides = [1, 1]} : vector<8x32xf32> to vector<8x1xf32>
    %191 = vector.shape_cast %190 : vector<8x1xf32> to vector<8x1xf32>
    %192 = vector.broadcast %191 : vector<8x1xf32> to vector<8x64xf32>
    %193 = tpu.concatenate %189, %192 in 1 : vector<8x64xf32>, vector<8x64xf32> -> vector<8x128xf32>
    %194 = arith.mulf %183, %6 : vector<8x128xf32>
    %195 = math.exp %194 : vector<8x128xf32>
    %c56 = arith.constant 56 : index
    %c0_44 = arith.constant 0 : index
    %196 = vector.load %arg5[%c56, %c0_44] : memref<128x128xf32, #tpu.memory_space<vmem>>, vector<8x128xf32>
    tpu.vector_store %arg5[%c56, %c0_44], %195 {strides = array<i32>} : memref<128x128xf32, #tpu.memory_space<vmem>>, vector<8x128xf32>,
    %197 = arith.mulf %193, %186 : vector<8x128xf32>
    %c56_45 = arith.constant 56 : index
    %c0_46 = arith.constant 0 : index
    %198 = vector.load %arg6[%c56_45, %c0_46] : memref<128x128xf32, #tpu.memory_space<vmem>>, vector<8x128xf32>
    tpu.vector_store %arg6[%c56_45, %c0_46], %197 {strides = array<i32>} : memref<128x128xf32, #tpu.memory_space<vmem>>, vector<8x128xf32>,
    %199 = vector.extract_strided_slice %45 {offsets = [8, 0], sizes = [1, 128], strides = [1, 1]} : vector<16x128xf32> to vector<1x128xf32>
    %200 = vector.shape_cast %199 : vector<1x128xf32> to vector<1x128xf32>
    %201 = vector.broadcast %200 : vector<1x128xf32> to vector<8x128xf32>
    %202 = vector.extract_strided_slice %52 {offsets = [8, 0], sizes = [1, 128], strides = [1, 1]} : vector<16x128xf32> to vector<1x128xf32>
    %203 = vector.shape_cast %202 : vector<1x128xf32> to vector<1x128xf32>
    %204 = vector.broadcast %203 : vector<1x128xf32> to vector<8x128xf32>
    %205 = vector.extract_strided_slice %38 {offsets = [0, 8], sizes = [8, 1], strides = [1, 1]} : vector<8x32xf32> to vector<8x1xf32>
    %206 = vector.shape_cast %205 : vector<8x1xf32> to vector<8x1xf32>
    %207 = vector.broadcast %206 : vector<8x1xf32> to vector<8x64xf32>
    %208 = vector.extract_strided_slice %38 {offsets = [0, 24], sizes = [8, 1], strides = [1, 1]} : vector<8x32xf32> to vector<8x1xf32>
    %209 = vector.shape_cast %208 : vector<8x1xf32> to vector<8x1xf32>
    %210 = vector.broadcast %209 : vector<8x1xf32> to vector<8x64xf32>
    %211 = tpu.concatenate %207, %210 in 1 : vector<8x64xf32>, vector<8x64xf32> -> vector<8x128xf32>
    %212 = arith.mulf %201, %6 : vector<8x128xf32>
    %213 = math.exp %212 : vector<8x128xf32>
    %c64 = arith.constant 64 : index
    %c0_47 = arith.constant 0 : index
    %214 = vector.load %arg5[%c64, %c0_47] : memref<128x128xf32, #tpu.memory_space<vmem>>, vector<8x128xf32>
    tpu.vector_store %arg5[%c64, %c0_47], %213 {strides = array<i32>} : memref<128x128xf32, #tpu.memory_space<vmem>>, vector<8x128xf32>,
    %215 = arith.mulf %211, %204 : vector<8x128xf32>
    %c64_48 = arith.constant 64 : index
    %c0_49 = arith.constant 0 : index
    %216 = vector.load %arg6[%c64_48, %c0_49] : memref<128x128xf32, #tpu.memory_space<vmem>>, vector<8x128xf32>
    tpu.vector_store %arg6[%c64_48, %c0_49], %215 {strides = array<i32>} : memref<128x128xf32, #tpu.memory_space<vmem>>, vector<8x128xf32>,
    %217 = vector.extract_strided_slice %45 {offsets = [9, 0], sizes = [1, 128], strides = [1, 1]} : vector<16x128xf32> to vector<1x128xf32>
    %218 = vector.shape_cast %217 : vector<1x128xf32> to vector<1x128xf32>
    %219 = vector.broadcast %218 : vector<1x128xf32> to vector<8x128xf32>
    %220 = vector.extract_strided_slice %52 {offsets = [9, 0], sizes = [1, 128], strides = [1, 1]} : vector<16x128xf32> to vector<1x128xf32>
    %221 = vector.shape_cast %220 : vector<1x128xf32> to vector<1x128xf32>
    %222 = vector.broadcast %221 : vector<1x128xf32> to vector<8x128xf32>
    %223 = vector.extract_strided_slice %38 {offsets = [0, 9], sizes = [8, 1], strides = [1, 1]} : vector<8x32xf32> to vector<8x1xf32>
    %224 = vector.shape_cast %223 : vector<8x1xf32> to vector<8x1xf32>
    %225 = vector.broadcast %224 : vector<8x1xf32> to vector<8x64xf32>
    %226 = vector.extract_strided_slice %38 {offsets = [0, 25], sizes = [8, 1], strides = [1, 1]} : vector<8x32xf32> to vector<8x1xf32>
    %227 = vector.shape_cast %226 : vector<8x1xf32> to vector<8x1xf32>
    %228 = vector.broadcast %227 : vector<8x1xf32> to vector<8x64xf32>
    %229 = tpu.concatenate %225, %228 in 1 : vector<8x64xf32>, vector<8x64xf32> -> vector<8x128xf32>
    %230 = arith.mulf %219, %6 : vector<8x128xf32>
    %231 = math.exp %230 : vector<8x128xf32>
    %c72 = arith.constant 72 : index
    %c0_50 = arith.constant 0 : index
    %232 = vector.load %arg5[%c72, %c0_50] : memref<128x128xf32, #tpu.memory_space<vmem>>, vector<8x128xf32>
    tpu.vector_store %arg5[%c72, %c0_50], %231 {strides = array<i32>} : memref<128x128xf32, #tpu.memory_space<vmem>>, vector<8x128xf32>,
    %233 = arith.mulf %229, %222 : vector<8x128xf32>
    %c72_51 = arith.constant 72 : index
    %c0_52 = arith.constant 0 : index
    %234 = vector.load %arg6[%c72_51, %c0_52] : memref<128x128xf32, #tpu.memory_space<vmem>>, vector<8x128xf32>
    tpu.vector_store %arg6[%c72_51, %c0_52], %233 {strides = array<i32>} : memref<128x128xf32, #tpu.memory_space<vmem>>, vector<8x128xf32>,
    %235 = vector.extract_strided_slice %45 {offsets = [10, 0], sizes = [1, 128], strides = [1, 1]} : vector<16x128xf32> to vector<1x128xf32>
    %236 = vector.shape_cast %235 : vector<1x128xf32> to vector<1x128xf32>
    %237 = vector.broadcast %236 : vector<1x128xf32> to vector<8x128xf32>
    %238 = vector.extract_strided_slice %52 {offsets = [10, 0], sizes = [1, 128], strides = [1, 1]} : vector<16x128xf32> to vector<1x128xf32>
    %239 = vector.shape_cast %238 : vector<1x128xf32> to vector<1x128xf32>
    %240 = vector.broadcast %239 : vector<1x128xf32> to vector<8x128xf32>
    %241 = vector.extract_strided_slice %38 {offsets = [0, 10], sizes = [8, 1], strides = [1, 1]} : vector<8x32xf32> to vector<8x1xf32>
    %242 = vector.shape_cast %241 : vector<8x1xf32> to vector<8x1xf32>
    %243 = vector.broadcast %242 : vector<8x1xf32> to vector<8x64xf32>
    %244 = vector.extract_strided_slice %38 {offsets = [0, 26], sizes = [8, 1], strides = [1, 1]} : vector<8x32xf32> to vector<8x1xf32>
    %245 = vector.shape_cast %244 : vector<8x1xf32> to vector<8x1xf32>
    %246 = vector.broadcast %245 : vector<8x1xf32> to vector<8x64xf32>
    %247 = tpu.concatenate %243, %246 in 1 : vector<8x64xf32>, vector<8x64xf32> -> vector<8x128xf32>
    %248 = arith.mulf %237, %6 : vector<8x128xf32>
    %249 = math.exp %248 : vector<8x128xf32>
    %c80 = arith.constant 80 : index
    %c0_53 = arith.constant 0 : index
    %250 = vector.load %arg5[%c80, %c0_53] : memref<128x128xf32, #tpu.memory_space<vmem>>, vector<8x128xf32>
    tpu.vector_store %arg5[%c80, %c0_53], %249 {strides = array<i32>} : memref<128x128xf32, #tpu.memory_space<vmem>>, vector<8x128xf32>,
    %251 = arith.mulf %247, %240 : vector<8x128xf32>
    %c80_54 = arith.constant 80 : index
    %c0_55 = arith.constant 0 : index
    %252 = vector.load %arg6[%c80_54, %c0_55] : memref<128x128xf32, #tpu.memory_space<vmem>>, vector<8x128xf32>
    tpu.vector_store %arg6[%c80_54, %c0_55], %251 {strides = array<i32>} : memref<128x128xf32, #tpu.memory_space<vmem>>, vector<8x128xf32>,
    %253 = vector.extract_strided_slice %45 {offsets = [11, 0], sizes = [1, 128], strides = [1, 1]} : vector<16x128xf32> to vector<1x128xf32>
    %254 = vector.shape_cast %253 : vector<1x128xf32> to vector<1x128xf32>
    %255 = vector.broadcast %254 : vector<1x128xf32> to vector<8x128xf32>
    %256 = vector.extract_strided_slice %52 {offsets = [11, 0], sizes = [1, 128], strides = [1, 1]} : vector<16x128xf32> to vector<1x128xf32>
    %257 = vector.shape_cast %256 : vector<1x128xf32> to vector<1x128xf32>
    %258 = vector.broadcast %257 : vector<1x128xf32> to vector<8x128xf32>
    %259 = vector.extract_strided_slice %38 {offsets = [0, 11], sizes = [8, 1], strides = [1, 1]} : vector<8x32xf32> to vector<8x1xf32>
    %260 = vector.shape_cast %259 : vector<8x1xf32> to vector<8x1xf32>
    %261 = vector.broadcast %260 : vector<8x1xf32> to vector<8x64xf32>
    %262 = vector.extract_strided_slice %38 {offsets = [0, 27], sizes = [8, 1], strides = [1, 1]} : vector<8x32xf32> to vector<8x1xf32>
    %263 = vector.shape_cast %262 : vector<8x1xf32> to vector<8x1xf32>
    %264 = vector.broadcast %263 : vector<8x1xf32> to vector<8x64xf32>
    %265 = tpu.concatenate %261, %264 in 1 : vector<8x64xf32>, vector<8x64xf32> -> vector<8x128xf32>
    %266 = arith.mulf %255, %6 : vector<8x128xf32>
    %267 = math.exp %266 : vector<8x128xf32>
    %c88 = arith.constant 88 : index
    %c0_56 = arith.constant 0 : index
    %268 = vector.load %arg5[%c88, %c0_56] : memref<128x128xf32, #tpu.memory_space<vmem>>, vector<8x128xf32>
    tpu.vector_store %arg5[%c88, %c0_56], %267 {strides = array<i32>} : memref<128x128xf32, #tpu.memory_space<vmem>>, vector<8x128xf32>,
    %269 = arith.mulf %265, %258 : vector<8x128xf32>
    %c88_57 = arith.constant 88 : index
    %c0_58 = arith.constant 0 : index
    %270 = vector.load %arg6[%c88_57, %c0_58] : memref<128x128xf32, #tpu.memory_space<vmem>>, vector<8x128xf32>
    tpu.vector_store %arg6[%c88_57, %c0_58], %269 {strides = array<i32>} : memref<128x128xf32, #tpu.memory_space<vmem>>, vector<8x128xf32>,
    %271 = vector.extract_strided_slice %45 {offsets = [12, 0], sizes = [1, 128], strides = [1, 1]} : vector<16x128xf32> to vector<1x128xf32>
    %272 = vector.shape_cast %271 : vector<1x128xf32> to vector<1x128xf32>
    %273 = vector.broadcast %272 : vector<1x128xf32> to vector<8x128xf32>
    %274 = vector.extract_strided_slice %52 {offsets = [12, 0], sizes = [1, 128], strides = [1, 1]} : vector<16x128xf32> to vector<1x128xf32>
    %275 = vector.shape_cast %274 : vector<1x128xf32> to vector<1x128xf32>
    %276 = vector.broadcast %275 : vector<1x128xf32> to vector<8x128xf32>
    %277 = vector.extract_strided_slice %38 {offsets = [0, 12], sizes = [8, 1], strides = [1, 1]} : vector<8x32xf32> to vector<8x1xf32>
    %278 = vector.shape_cast %277 : vector<8x1xf32> to vector<8x1xf32>
    %279 = vector.broadcast %278 : vector<8x1xf32> to vector<8x64xf32>
    %280 = vector.extract_strided_slice %38 {offsets = [0, 28], sizes = [8, 1], strides = [1, 1]} : vector<8x32xf32> to vector<8x1xf32>
    %281 = vector.shape_cast %280 : vector<8x1xf32> to vector<8x1xf32>
    %282 = vector.broadcast %281 : vector<8x1xf32> to vector<8x64xf32>
    %283 = tpu.concatenate %279, %282 in 1 : vector<8x64xf32>, vector<8x64xf32> -> vector<8x128xf32>
    %284 = arith.mulf %273, %6 : vector<8x128xf32>
    %285 = math.exp %284 : vector<8x128xf32>
    %c96 = arith.constant 96 : index
    %c0_59 = arith.constant 0 : index
    %286 = vector.load %arg5[%c96, %c0_59] : memref<128x128xf32, #tpu.memory_space<vmem>>, vector<8x128xf32>
    tpu.vector_store %arg5[%c96, %c0_59], %285 {strides = array<i32>} : memref<128x128xf32, #tpu.memory_space<vmem>>, vector<8x128xf32>,
    %287 = arith.mulf %283, %276 : vector<8x128xf32>
    %c96_60 = arith.constant 96 : index
    %c0_61 = arith.constant 0 : index
    %288 = vector.load %arg6[%c96_60, %c0_61] : memref<128x128xf32, #tpu.memory_space<vmem>>, vector<8x128xf32>
    tpu.vector_store %arg6[%c96_60, %c0_61], %287 {strides = array<i32>} : memref<128x128xf32, #tpu.memory_space<vmem>>, vector<8x128xf32>,
    %289 = vector.extract_strided_slice %45 {offsets = [13, 0], sizes = [1, 128], strides = [1, 1]} : vector<16x128xf32> to vector<1x128xf32>
    %290 = vector.shape_cast %289 : vector<1x128xf32> to vector<1x128xf32>
    %291 = vector.broadcast %290 : vector<1x128xf32> to vector<8x128xf32>
    %292 = vector.extract_strided_slice %52 {offsets = [13, 0], sizes = [1, 128], strides = [1, 1]} : vector<16x128xf32> to vector<1x128xf32>
    %293 = vector.shape_cast %292 : vector<1x128xf32> to vector<1x128xf32>
    %294 = vector.broadcast %293 : vector<1x128xf32> to vector<8x128xf32>
    %295 = vector.extract_strided_slice %38 {offsets = [0, 13], sizes = [8, 1], strides = [1, 1]} : vector<8x32xf32> to vector<8x1xf32>
    %296 = vector.shape_cast %295 : vector<8x1xf32> to vector<8x1xf32>
    %297 = vector.broadcast %296 : vector<8x1xf32> to vector<8x64xf32>
    %298 = vector.extract_strided_slice %38 {offsets = [0, 29], sizes = [8, 1], strides = [1, 1]} : vector<8x32xf32> to vector<8x1xf32>
    %299 = vector.shape_cast %298 : vector<8x1xf32> to vector<8x1xf32>
    %300 = vector.broadcast %299 : vector<8x1xf32> to vector<8x64xf32>
    %301 = tpu.concatenate %297, %300 in 1 : vector<8x64xf32>, vector<8x64xf32> -> vector<8x128xf32>
    %302 = arith.mulf %291, %6 : vector<8x128xf32>
    %303 = math.exp %302 : vector<8x128xf32>
    %c104 = arith.constant 104 : index
    %c0_62 = arith.constant 0 : index
    %304 = vector.load %arg5[%c104, %c0_62] : memref<128x128xf32, #tpu.memory_space<vmem>>, vector<8x128xf32>
    tpu.vector_store %arg5[%c104, %c0_62], %303 {strides = array<i32>} : memref<128x128xf32, #tpu.memory_space<vmem>>, vector<8x128xf32>,
    %305 = arith.mulf %301, %294 : vector<8x128xf32>
    %c104_63 = arith.constant 104 : index
    %c0_64 = arith.constant 0 : index
    %306 = vector.load %arg6[%c104_63, %c0_64] : memref<128x128xf32, #tpu.memory_space<vmem>>, vector<8x128xf32>
    tpu.vector_store %arg6[%c104_63, %c0_64], %305 {strides = array<i32>} : memref<128x128xf32, #tpu.memory_space<vmem>>, vector<8x128xf32>,
    %307 = vector.extract_strided_slice %45 {offsets = [14, 0], sizes = [1, 128], strides = [1, 1]} : vector<16x128xf32> to vector<1x128xf32>
    %308 = vector.shape_cast %307 : vector<1x128xf32> to vector<1x128xf32>
    %309 = vector.broadcast %308 : vector<1x128xf32> to vector<8x128xf32>
    %310 = vector.extract_strided_slice %52 {offsets = [14, 0], sizes = [1, 128], strides = [1, 1]} : vector<16x128xf32> to vector<1x128xf32>
    %311 = vector.shape_cast %310 : vector<1x128xf32> to vector<1x128xf32>
    %312 = vector.broadcast %311 : vector<1x128xf32> to vector<8x128xf32>
    %313 = vector.extract_strided_slice %38 {offsets = [0, 14], sizes = [8, 1], strides = [1, 1]} : vector<8x32xf32> to vector<8x1xf32>
    %314 = vector.shape_cast %313 : vector<8x1xf32> to vector<8x1xf32>
    %315 = vector.broadcast %314 : vector<8x1xf32> to vector<8x64xf32>
    %316 = vector.extract_strided_slice %38 {offsets = [0, 30], sizes = [8, 1], strides = [1, 1]} : vector<8x32xf32> to vector<8x1xf32>
    %317 = vector.shape_cast %316 : vector<8x1xf32> to vector<8x1xf32>
    %318 = vector.broadcast %317 : vector<8x1xf32> to vector<8x64xf32>
    %319 = tpu.concatenate %315, %318 in 1 : vector<8x64xf32>, vector<8x64xf32> -> vector<8x128xf32>
    %320 = arith.mulf %309, %6 : vector<8x128xf32>
    %321 = math.exp %320 : vector<8x128xf32>
    %c112 = arith.constant 112 : index
    %c0_65 = arith.constant 0 : index
    %322 = vector.load %arg5[%c112, %c0_65] : memref<128x128xf32, #tpu.memory_space<vmem>>, vector<8x128xf32>
    tpu.vector_store %arg5[%c112, %c0_65], %321 {strides = array<i32>} : memref<128x128xf32, #tpu.memory_space<vmem>>, vector<8x128xf32>,
    %323 = arith.mulf %319, %312 : vector<8x128xf32>
    %c112_66 = arith.constant 112 : index
    %c0_67 = arith.constant 0 : index
    %324 = vector.load %arg6[%c112_66, %c0_67] : memref<128x128xf32, #tpu.memory_space<vmem>>, vector<8x128xf32>
    tpu.vector_store %arg6[%c112_66, %c0_67], %323 {strides = array<i32>} : memref<128x128xf32, #tpu.memory_space<vmem>>, vector<8x128xf32>,
    %325 = vector.extract_strided_slice %45 {offsets = [15, 0], sizes = [1, 128], strides = [1, 1]} : vector<16x128xf32> to vector<1x128xf32>
    %326 = vector.shape_cast %325 : vector<1x128xf32> to vector<1x128xf32>
    %327 = vector.broadcast %326 : vector<1x128xf32> to vector<8x128xf32>
    %328 = vector.extract_strided_slice %52 {offsets = [15, 0], sizes = [1, 128], strides = [1, 1]} : vector<16x128xf32> to vector<1x128xf32>
    %329 = vector.shape_cast %328 : vector<1x128xf32> to vector<1x128xf32>
    %330 = vector.broadcast %329 : vector<1x128xf32> to vector<8x128xf32>
    %331 = vector.extract_strided_slice %38 {offsets = [0, 15], sizes = [8, 1], strides = [1, 1]} : vector<8x32xf32> to vector<8x1xf32>
    %332 = vector.shape_cast %331 : vector<8x1xf32> to vector<8x1xf32>
    %333 = vector.broadcast %332 : vector<8x1xf32> to vector<8x64xf32>
    %334 = vector.extract_strided_slice %38 {offsets = [0, 31], sizes = [8, 1], strides = [1, 1]} : vector<8x32xf32> to vector<8x1xf32>
    %335 = vector.shape_cast %334 : vector<8x1xf32> to vector<8x1xf32>
    %336 = vector.broadcast %335 : vector<8x1xf32> to vector<8x64xf32>
    %337 = tpu.concatenate %333, %336 in 1 : vector<8x64xf32>, vector<8x64xf32> -> vector<8x128xf32>
    %338 = arith.mulf %327, %6 : vector<8x128xf32>
    %339 = math.exp %338 : vector<8x128xf32>
    %c120 = arith.constant 120 : index
    %c0_68 = arith.constant 0 : index
    %340 = vector.load %arg5[%c120, %c0_68] : memref<128x128xf32, #tpu.memory_space<vmem>>, vector<8x128xf32>
    tpu.vector_store %arg5[%c120, %c0_68], %339 {strides = array<i32>} : memref<128x128xf32, #tpu.memory_space<vmem>>, vector<8x128xf32>,
    %341 = arith.mulf %337, %330 : vector<8x128xf32>
    %c120_69 = arith.constant 120 : index
    %c0_70 = arith.constant 0 : index
    %342 = vector.load %arg6[%c120_69, %c0_70] : memref<128x128xf32, #tpu.memory_space<vmem>>, vector<8x128xf32>
    tpu.vector_store %arg6[%c120_69, %c0_70], %341 {strides = array<i32>} : memref<128x128xf32, #tpu.memory_space<vmem>>, vector<8x128xf32>,
    %cst_71 = arith.constant 0.000000e+00 : f32
    %343 = vector.broadcast %cst_71 : f32 to vector<8x128xf32>
    %c0_72 = arith.constant 0 : index
    %c0_73 = arith.constant 0 : index
    %344 = vector.load %arg5[%c0_72, %c0_73] : memref<128x128xf32, #tpu.memory_space<vmem>>, vector<8x128xf32>
    %345 = arith.mulf %344, %343 : vector<8x128xf32>
    %c0_74 = arith.constant 0 : index
    %c0_75 = arith.constant 0 : index
    %346 = vector.load %arg6[%c0_74, %c0_75] : memref<128x128xf32, #tpu.memory_space<vmem>>, vector<8x128xf32>
    %347 = arith.addf %345, %346 : vector<8x128xf32>
    %c0_76 = arith.constant 0 : index
    %c0_77 = arith.constant 0 : index
    %348 = vector.load %arg7[%c0_76, %c0_77] : memref<128x128xf32, #tpu.memory_space<vmem>>, vector<8x128xf32>
    tpu.vector_store %arg7[%c0_76, %c0_77], %347 {strides = array<i32>} : memref<128x128xf32, #tpu.memory_space<vmem>>, vector<8x128xf32>,
    %c8_78 = arith.constant 8 : index
    %c0_79 = arith.constant 0 : index
    %349 = vector.load %arg5[%c8_78, %c0_79] : memref<128x128xf32, #tpu.memory_space<vmem>>, vector<8x128xf32>
    %350 = arith.mulf %349, %347 : vector<8x128xf32>
    %c8_80 = arith.constant 8 : index
    %c0_81 = arith.constant 0 : index
    %351 = vector.load %arg6[%c8_80, %c0_81] : memref<128x128xf32, #tpu.memory_space<vmem>>, vector<8x128xf32>
    %352 = arith.addf %350, %351 : vector<8x128xf32>
    %c8_82 = arith.constant 8 : index
    %c0_83 = arith.constant 0 : index
    %353 = vector.load %arg7[%c8_82, %c0_83] : memref<128x128xf32, #tpu.memory_space<vmem>>, vector<8x128xf32>
    tpu.vector_store %arg7[%c8_82, %c0_83], %352 {strides = array<i32>} : memref<128x128xf32, #tpu.memory_space<vmem>>, vector<8x128xf32>,
    %c16_84 = arith.constant 16 : index
    %c0_85 = arith.constant 0 : index
    %354 = vector.load %arg5[%c16_84, %c0_85] : memref<128x128xf32, #tpu.memory_space<vmem>>, vector<8x128xf32>
    %355 = arith.mulf %354, %352 : vector<8x128xf32>
    %c16_86 = arith.constant 16 : index
    %c0_87 = arith.constant 0 : index
    %356 = vector.load %arg6[%c16_86, %c0_87] : memref<128x128xf32, #tpu.memory_space<vmem>>, vector<8x128xf32>
    %357 = arith.addf %355, %356 : vector<8x128xf32>
    %c16_88 = arith.constant 16 : index
    %c0_89 = arith.constant 0 : index
    %358 = vector.load %arg7[%c16_88, %c0_89] : memref<128x128xf32, #tpu.memory_space<vmem>>, vector<8x128xf32>
    tpu.vector_store %arg7[%c16_88, %c0_89], %357 {strides = array<i32>} : memref<128x128xf32, #tpu.memory_space<vmem>>, vector<8x128xf32>,
    %c24_90 = arith.constant 24 : index
    %c0_91 = arith.constant 0 : index
    %359 = vector.load %arg5[%c24_90, %c0_91] : memref<128x128xf32, #tpu.memory_space<vmem>>, vector<8x128xf32>
    %360 = arith.mulf %359, %357 : vector<8x128xf32>
    %c24_92 = arith.constant 24 : index
    %c0_93 = arith.constant 0 : index
    %361 = vector.load %arg6[%c24_92, %c0_93] : memref<128x128xf32, #tpu.memory_space<vmem>>, vector<8x128xf32>
    %362 = arith.addf %360, %361 : vector<8x128xf32>
    %c24_94 = arith.constant 24 : index
    %c0_95 = arith.constant 0 : index
    %363 = vector.load %arg7[%c24_94, %c0_95] : memref<128x128xf32, #tpu.memory_space<vmem>>, vector<8x128xf32>
    tpu.vector_store %arg7[%c24_94, %c0_95], %362 {strides = array<i32>} : memref<128x128xf32, #tpu.memory_space<vmem>>, vector<8x128xf32>,
    %c32_96 = arith.constant 32 : index
    %c0_97 = arith.constant 0 : index
    %364 = vector.load %arg5[%c32_96, %c0_97] : memref<128x128xf32, #tpu.memory_space<vmem>>, vector<8x128xf32>
    %365 = arith.mulf %364, %362 : vector<8x128xf32>
    %c32_98 = arith.constant 32 : index
    %c0_99 = arith.constant 0 : index
    %366 = vector.load %arg6[%c32_98, %c0_99] : memref<128x128xf32, #tpu.memory_space<vmem>>, vector<8x128xf32>
    %367 = arith.addf %365, %366 : vector<8x128xf32>
    %c32_100 = arith.constant 32 : index
    %c0_101 = arith.constant 0 : index
    %368 = vector.load %arg7[%c32_100, %c0_101] : memref<128x128xf32, #tpu.memory_space<vmem>>, vector<8x128xf32>
    tpu.vector_store %arg7[%c32_100, %c0_101], %367 {strides = array<i32>} : memref<128x128xf32, #tpu.memory_space<vmem>>, vector<8x128xf32>,
    %c40_102 = arith.constant 40 : index
    %c0_103 = arith.constant 0 : index
    %369 = vector.load %arg5[%c40_102, %c0_103] : memref<128x128xf32, #tpu.memory_space<vmem>>, vector<8x128xf32>
    %370 = arith.mulf %369, %367 : vector<8x128xf32>
    %c40_104 = arith.constant 40 : index
    %c0_105 = arith.constant 0 : index
    %371 = vector.load %arg6[%c40_104, %c0_105] : memref<128x128xf32, #tpu.memory_space<vmem>>, vector<8x128xf32>
    %372 = arith.addf %370, %371 : vector<8x128xf32>
    %c40_106 = arith.constant 40 : index
    %c0_107 = arith.constant 0 : index
    %373 = vector.load %arg7[%c40_106, %c0_107] : memref<128x128xf32, #tpu.memory_space<vmem>>, vector<8x128xf32>
    tpu.vector_store %arg7[%c40_106, %c0_107], %372 {strides = array<i32>} : memref<128x128xf32, #tpu.memory_space<vmem>>, vector<8x128xf32>,
    %c48_108 = arith.constant 48 : index
    %c0_109 = arith.constant 0 : index
    %374 = vector.load %arg5[%c48_108, %c0_109] : memref<128x128xf32, #tpu.memory_space<vmem>>, vector<8x128xf32>
    %375 = arith.mulf %374, %372 : vector<8x128xf32>
    %c48_110 = arith.constant 48 : index
    %c0_111 = arith.constant 0 : index
    %376 = vector.load %arg6[%c48_110, %c0_111] : memref<128x128xf32, #tpu.memory_space<vmem>>, vector<8x128xf32>
    %377 = arith.addf %375, %376 : vector<8x128xf32>
    %c48_112 = arith.constant 48 : index
    %c0_113 = arith.constant 0 : index
    %378 = vector.load %arg7[%c48_112, %c0_113] : memref<128x128xf32, #tpu.memory_space<vmem>>, vector<8x128xf32>
    tpu.vector_store %arg7[%c48_112, %c0_113], %377 {strides = array<i32>} : memref<128x128xf32, #tpu.memory_space<vmem>>, vector<8x128xf32>,
    %c56_114 = arith.constant 56 : index
    %c0_115 = arith.constant 0 : index
    %379 = vector.load %arg5[%c56_114, %c0_115] : memref<128x128xf32, #tpu.memory_space<vmem>>, vector<8x128xf32>
    %380 = arith.mulf %379, %377 : vector<8x128xf32>
    %c56_116 = arith.constant 56 : index
    %c0_117 = arith.constant 0 : index
    %381 = vector.load %arg6[%c56_116, %c0_117] : memref<128x128xf32, #tpu.memory_space<vmem>>, vector<8x128xf32>
    %382 = arith.addf %380, %381 : vector<8x128xf32>
    %c56_118 = arith.constant 56 : index
    %c0_119 = arith.constant 0 : index
    %383 = vector.load %arg7[%c56_118, %c0_119] : memref<128x128xf32, #tpu.memory_space<vmem>>, vector<8x128xf32>
    tpu.vector_store %arg7[%c56_118, %c0_119], %382 {strides = array<i32>} : memref<128x128xf32, #tpu.memory_space<vmem>>, vector<8x128xf32>,
    %c64_120 = arith.constant 64 : index
    %c0_121 = arith.constant 0 : index
    %384 = vector.load %arg5[%c64_120, %c0_121] : memref<128x128xf32, #tpu.memory_space<vmem>>, vector<8x128xf32>
    %385 = arith.mulf %384, %382 : vector<8x128xf32>
    %c64_122 = arith.constant 64 : index
    %c0_123 = arith.constant 0 : index
    %386 = vector.load %arg6[%c64_122, %c0_123] : memref<128x128xf32, #tpu.memory_space<vmem>>, vector<8x128xf32>
    %387 = arith.addf %385, %386 : vector<8x128xf32>
    %c64_124 = arith.constant 64 : index
    %c0_125 = arith.constant 0 : index
    %388 = vector.load %arg7[%c64_124, %c0_125] : memref<128x128xf32, #tpu.memory_space<vmem>>, vector<8x128xf32>
    tpu.vector_store %arg7[%c64_124, %c0_125], %387 {strides = array<i32>} : memref<128x128xf32, #tpu.memory_space<vmem>>, vector<8x128xf32>,
    %c72_126 = arith.constant 72 : index
    %c0_127 = arith.constant 0 : index
    %389 = vector.load %arg5[%c72_126, %c0_127] : memref<128x128xf32, #tpu.memory_space<vmem>>, vector<8x128xf32>
    %390 = arith.mulf %389, %387 : vector<8x128xf32>
    %c72_128 = arith.constant 72 : index
    %c0_129 = arith.constant 0 : index
    %391 = vector.load %arg6[%c72_128, %c0_129] : memref<128x128xf32, #tpu.memory_space<vmem>>, vector<8x128xf32>
    %392 = arith.addf %390, %391 : vector<8x128xf32>
    %c72_130 = arith.constant 72 : index
    %c0_131 = arith.constant 0 : index
    %393 = vector.load %arg7[%c72_130, %c0_131] : memref<128x128xf32, #tpu.memory_space<vmem>>, vector<8x128xf32>
    tpu.vector_store %arg7[%c72_130, %c0_131], %392 {strides = array<i32>} : memref<128x128xf32, #tpu.memory_space<vmem>>, vector<8x128xf32>,
    %c80_132 = arith.constant 80 : index
    %c0_133 = arith.constant 0 : index
    %394 = vector.load %arg5[%c80_132, %c0_133] : memref<128x128xf32, #tpu.memory_space<vmem>>, vector<8x128xf32>
    %395 = arith.mulf %394, %392 : vector<8x128xf32>
    %c80_134 = arith.constant 80 : index
    %c0_135 = arith.constant 0 : index
    %396 = vector.load %arg6[%c80_134, %c0_135] : memref<128x128xf32, #tpu.memory_space<vmem>>, vector<8x128xf32>
    %397 = arith.addf %395, %396 : vector<8x128xf32>
    %c80_136 = arith.constant 80 : index
    %c0_137 = arith.constant 0 : index
    %398 = vector.load %arg7[%c80_136, %c0_137] : memref<128x128xf32, #tpu.memory_space<vmem>>, vector<8x128xf32>
    tpu.vector_store %arg7[%c80_136, %c0_137], %397 {strides = array<i32>} : memref<128x128xf32, #tpu.memory_space<vmem>>, vector<8x128xf32>,
    %c88_138 = arith.constant 88 : index
    %c0_139 = arith.constant 0 : index
    %399 = vector.load %arg5[%c88_138, %c0_139] : memref<128x128xf32, #tpu.memory_space<vmem>>, vector<8x128xf32>
    %400 = arith.mulf %399, %397 : vector<8x128xf32>
    %c88_140 = arith.constant 88 : index
    %c0_141 = arith.constant 0 : index
    %401 = vector.load %arg6[%c88_140, %c0_141] : memref<128x128xf32, #tpu.memory_space<vmem>>, vector<8x128xf32>
    %402 = arith.addf %400, %401 : vector<8x128xf32>
    %c88_142 = arith.constant 88 : index
    %c0_143 = arith.constant 0 : index
    %403 = vector.load %arg7[%c88_142, %c0_143] : memref<128x128xf32, #tpu.memory_space<vmem>>, vector<8x128xf32>
    tpu.vector_store %arg7[%c88_142, %c0_143], %402 {strides = array<i32>} : memref<128x128xf32, #tpu.memory_space<vmem>>, vector<8x128xf32>,
    %c96_144 = arith.constant 96 : index
    %c0_145 = arith.constant 0 : index
    %404 = vector.load %arg5[%c96_144, %c0_145] : memref<128x128xf32, #tpu.memory_space<vmem>>, vector<8x128xf32>
    %405 = arith.mulf %404, %402 : vector<8x128xf32>
    %c96_146 = arith.constant 96 : index
    %c0_147 = arith.constant 0 : index
    %406 = vector.load %arg6[%c96_146, %c0_147] : memref<128x128xf32, #tpu.memory_space<vmem>>, vector<8x128xf32>
    %407 = arith.addf %405, %406 : vector<8x128xf32>
    %c96_148 = arith.constant 96 : index
    %c0_149 = arith.constant 0 : index
    %408 = vector.load %arg7[%c96_148, %c0_149] : memref<128x128xf32, #tpu.memory_space<vmem>>, vector<8x128xf32>
    tpu.vector_store %arg7[%c96_148, %c0_149], %407 {strides = array<i32>} : memref<128x128xf32, #tpu.memory_space<vmem>>, vector<8x128xf32>,
    %c104_150 = arith.constant 104 : index
    %c0_151 = arith.constant 0 : index
    %409 = vector.load %arg5[%c104_150, %c0_151] : memref<128x128xf32, #tpu.memory_space<vmem>>, vector<8x128xf32>
    %410 = arith.mulf %409, %407 : vector<8x128xf32>
    %c104_152 = arith.constant 104 : index
    %c0_153 = arith.constant 0 : index
    %411 = vector.load %arg6[%c104_152, %c0_153] : memref<128x128xf32, #tpu.memory_space<vmem>>, vector<8x128xf32>
    %412 = arith.addf %410, %411 : vector<8x128xf32>
    %c104_154 = arith.constant 104 : index
    %c0_155 = arith.constant 0 : index
    %413 = vector.load %arg7[%c104_154, %c0_155] : memref<128x128xf32, #tpu.memory_space<vmem>>, vector<8x128xf32>
    tpu.vector_store %arg7[%c104_154, %c0_155], %412 {strides = array<i32>} : memref<128x128xf32, #tpu.memory_space<vmem>>, vector<8x128xf32>,
    %c112_156 = arith.constant 112 : index
    %c0_157 = arith.constant 0 : index
    %414 = vector.load %arg5[%c112_156, %c0_157] : memref<128x128xf32, #tpu.memory_space<vmem>>, vector<8x128xf32>
    %415 = arith.mulf %414, %412 : vector<8x128xf32>
    %c112_158 = arith.constant 112 : index
    %c0_159 = arith.constant 0 : index
    %416 = vector.load %arg6[%c112_158, %c0_159] : memref<128x128xf32, #tpu.memory_space<vmem>>, vector<8x128xf32>
    %417 = arith.addf %415, %416 : vector<8x128xf32>
    %c112_160 = arith.constant 112 : index
    %c0_161 = arith.constant 0 : index
    %418 = vector.load %arg7[%c112_160, %c0_161] : memref<128x128xf32, #tpu.memory_space<vmem>>, vector<8x128xf32>
    tpu.vector_store %arg7[%c112_160, %c0_161], %417 {strides = array<i32>} : memref<128x128xf32, #tpu.memory_space<vmem>>, vector<8x128xf32>,
    %c120_162 = arith.constant 120 : index
    %c0_163 = arith.constant 0 : index
    %419 = vector.load %arg5[%c120_162, %c0_163] : memref<128x128xf32, #tpu.memory_space<vmem>>, vector<8x128xf32>
    %420 = arith.mulf %419, %417 : vector<8x128xf32>
    %c120_164 = arith.constant 120 : index
    %c0_165 = arith.constant 0 : index
    %421 = vector.load %arg6[%c120_164, %c0_165] : memref<128x128xf32, #tpu.memory_space<vmem>>, vector<8x128xf32>
    %422 = arith.addf %420, %421 : vector<8x128xf32>
    %c120_166 = arith.constant 120 : index
    %c0_167 = arith.constant 0 : index
    %423 = vector.load %arg7[%c120_166, %c0_167] : memref<128x128xf32, #tpu.memory_space<vmem>>, vector<8x128xf32>
    tpu.vector_store %arg7[%c120_166, %c0_167], %422 {strides = array<i32>} : memref<128x128xf32, #tpu.memory_space<vmem>>, vector<8x128xf32>,
    %424 = vector.extract_strided_slice %39 {offsets = [0, 0], sizes = [8, 1], strides = [1, 1]} : vector<8x32xf32> to vector<8x1xf32>
    %425 = vector.shape_cast %424 : vector<8x1xf32> to vector<8x1xf32>
    %426 = vector.broadcast %425 : vector<8x1xf32> to vector<8x64xf32>
    %427 = vector.extract_strided_slice %39 {offsets = [0, 16], sizes = [8, 1], strides = [1, 1]} : vector<8x32xf32> to vector<8x1xf32>
    %428 = vector.shape_cast %427 : vector<8x1xf32> to vector<8x1xf32>
    %429 = vector.broadcast %428 : vector<8x1xf32> to vector<8x64xf32>
    %430 = tpu.concatenate %426, %429 in 1 : vector<8x64xf32>, vector<8x64xf32> -> vector<8x128xf32>
    %c0_168 = arith.constant 0 : index
    %c0_169 = arith.constant 0 : index
    %431 = vector.load %arg7[%c0_168, %c0_169] : memref<128x128xf32, #tpu.memory_space<vmem>>, vector<8x128xf32>
    %432 = arith.mulf %430, %431 : vector<8x128xf32>
    %cst_170 = arith.constant dense<0.000000e+00> : vector<128xf32>
    %433 = vector.multi_reduction <add>, %432, %cst_170 [0] : vector<8x128xf32> to vector<128xf32>
    %434 = vector.shape_cast %433 : vector<128xf32> to vector<1x128xf32>
    %435 = vector.extract_strided_slice %39 {offsets = [0, 1], sizes = [8, 1], strides = [1, 1]} : vector<8x32xf32> to vector<8x1xf32>
    %436 = vector.shape_cast %435 : vector<8x1xf32> to vector<8x1xf32>
    %437 = vector.broadcast %436 : vector<8x1xf32> to vector<8x64xf32>
    %438 = vector.extract_strided_slice %39 {offsets = [0, 17], sizes = [8, 1], strides = [1, 1]} : vector<8x32xf32> to vector<8x1xf32>
    %439 = vector.shape_cast %438 : vector<8x1xf32> to vector<8x1xf32>
    %440 = vector.broadcast %439 : vector<8x1xf32> to vector<8x64xf32>
    %441 = tpu.concatenate %437, %440 in 1 : vector<8x64xf32>, vector<8x64xf32> -> vector<8x128xf32>
    %c8_171 = arith.constant 8 : index
    %c0_172 = arith.constant 0 : index
    %442 = vector.load %arg7[%c8_171, %c0_172] : memref<128x128xf32, #tpu.memory_space<vmem>>, vector<8x128xf32>
    %443 = arith.mulf %441, %442 : vector<8x128xf32>
    %cst_173 = arith.constant dense<0.000000e+00> : vector<128xf32>
    %444 = vector.multi_reduction <add>, %443, %cst_173 [0] : vector<8x128xf32> to vector<128xf32>
    %445 = vector.shape_cast %444 : vector<128xf32> to vector<1x128xf32>
    %446 = vector.extract_strided_slice %39 {offsets = [0, 2], sizes = [8, 1], strides = [1, 1]} : vector<8x32xf32> to vector<8x1xf32>
    %447 = vector.shape_cast %446 : vector<8x1xf32> to vector<8x1xf32>
    %448 = vector.broadcast %447 : vector<8x1xf32> to vector<8x64xf32>
    %449 = vector.extract_strided_slice %39 {offsets = [0, 18], sizes = [8, 1], strides = [1, 1]} : vector<8x32xf32> to vector<8x1xf32>
    %450 = vector.shape_cast %449 : vector<8x1xf32> to vector<8x1xf32>
    %451 = vector.broadcast %450 : vector<8x1xf32> to vector<8x64xf32>
    %452 = tpu.concatenate %448, %451 in 1 : vector<8x64xf32>, vector<8x64xf32> -> vector<8x128xf32>
    %c16_174 = arith.constant 16 : index
    %c0_175 = arith.constant 0 : index
    %453 = vector.load %arg7[%c16_174, %c0_175] : memref<128x128xf32, #tpu.memory_space<vmem>>, vector<8x128xf32>
    %454 = arith.mulf %452, %453 : vector<8x128xf32>
    %cst_176 = arith.constant dense<0.000000e+00> : vector<128xf32>
    %455 = vector.multi_reduction <add>, %454, %cst_176 [0] : vector<8x128xf32> to vector<128xf32>
    %456 = vector.shape_cast %455 : vector<128xf32> to vector<1x128xf32>
    %457 = vector.extract_strided_slice %39 {offsets = [0, 3], sizes = [8, 1], strides = [1, 1]} : vector<8x32xf32> to vector<8x1xf32>
    %458 = vector.shape_cast %457 : vector<8x1xf32> to vector<8x1xf32>
    %459 = vector.broadcast %458 : vector<8x1xf32> to vector<8x64xf32>
    %460 = vector.extract_strided_slice %39 {offsets = [0, 19], sizes = [8, 1], strides = [1, 1]} : vector<8x32xf32> to vector<8x1xf32>
    %461 = vector.shape_cast %460 : vector<8x1xf32> to vector<8x1xf32>
    %462 = vector.broadcast %461 : vector<8x1xf32> to vector<8x64xf32>
    %463 = tpu.concatenate %459, %462 in 1 : vector<8x64xf32>, vector<8x64xf32> -> vector<8x128xf32>
    %c24_177 = arith.constant 24 : index
    %c0_178 = arith.constant 0 : index
    %464 = vector.load %arg7[%c24_177, %c0_178] : memref<128x128xf32, #tpu.memory_space<vmem>>, vector<8x128xf32>
    %465 = arith.mulf %463, %464 : vector<8x128xf32>
    %cst_179 = arith.constant dense<0.000000e+00> : vector<128xf32>
    %466 = vector.multi_reduction <add>, %465, %cst_179 [0] : vector<8x128xf32> to vector<128xf32>
    %467 = vector.shape_cast %466 : vector<128xf32> to vector<1x128xf32>
    %468 = vector.extract_strided_slice %39 {offsets = [0, 4], sizes = [8, 1], strides = [1, 1]} : vector<8x32xf32> to vector<8x1xf32>
    %469 = vector.shape_cast %468 : vector<8x1xf32> to vector<8x1xf32>
    %470 = vector.broadcast %469 : vector<8x1xf32> to vector<8x64xf32>
    %471 = vector.extract_strided_slice %39 {offsets = [0, 20], sizes = [8, 1], strides = [1, 1]} : vector<8x32xf32> to vector<8x1xf32>
    %472 = vector.shape_cast %471 : vector<8x1xf32> to vector<8x1xf32>
    %473 = vector.broadcast %472 : vector<8x1xf32> to vector<8x64xf32>
    %474 = tpu.concatenate %470, %473 in 1 : vector<8x64xf32>, vector<8x64xf32> -> vector<8x128xf32>
    %c32_180 = arith.constant 32 : index
    %c0_181 = arith.constant 0 : index
    %475 = vector.load %arg7[%c32_180, %c0_181] : memref<128x128xf32, #tpu.memory_space<vmem>>, vector<8x128xf32>
    %476 = arith.mulf %474, %475 : vector<8x128xf32>
    %cst_182 = arith.constant dense<0.000000e+00> : vector<128xf32>
    %477 = vector.multi_reduction <add>, %476, %cst_182 [0] : vector<8x128xf32> to vector<128xf32>
    %478 = vector.shape_cast %477 : vector<128xf32> to vector<1x128xf32>
    %479 = vector.extract_strided_slice %39 {offsets = [0, 5], sizes = [8, 1], strides = [1, 1]} : vector<8x32xf32> to vector<8x1xf32>
    %480 = vector.shape_cast %479 : vector<8x1xf32> to vector<8x1xf32>
    %481 = vector.broadcast %480 : vector<8x1xf32> to vector<8x64xf32>
    %482 = vector.extract_strided_slice %39 {offsets = [0, 21], sizes = [8, 1], strides = [1, 1]} : vector<8x32xf32> to vector<8x1xf32>
    %483 = vector.shape_cast %482 : vector<8x1xf32> to vector<8x1xf32>
    %484 = vector.broadcast %483 : vector<8x1xf32> to vector<8x64xf32>
    %485 = tpu.concatenate %481, %484 in 1 : vector<8x64xf32>, vector<8x64xf32> -> vector<8x128xf32>
    %c40_183 = arith.constant 40 : index
    %c0_184 = arith.constant 0 : index
    %486 = vector.load %arg7[%c40_183, %c0_184] : memref<128x128xf32, #tpu.memory_space<vmem>>, vector<8x128xf32>
    %487 = arith.mulf %485, %486 : vector<8x128xf32>
    %cst_185 = arith.constant dense<0.000000e+00> : vector<128xf32>
    %488 = vector.multi_reduction <add>, %487, %cst_185 [0] : vector<8x128xf32> to vector<128xf32>
    %489 = vector.shape_cast %488 : vector<128xf32> to vector<1x128xf32>
    %490 = vector.extract_strided_slice %39 {offsets = [0, 6], sizes = [8, 1], strides = [1, 1]} : vector<8x32xf32> to vector<8x1xf32>
    %491 = vector.shape_cast %490 : vector<8x1xf32> to vector<8x1xf32>
    %492 = vector.broadcast %491 : vector<8x1xf32> to vector<8x64xf32>
    %493 = vector.extract_strided_slice %39 {offsets = [0, 22], sizes = [8, 1], strides = [1, 1]} : vector<8x32xf32> to vector<8x1xf32>
    %494 = vector.shape_cast %493 : vector<8x1xf32> to vector<8x1xf32>
    %495 = vector.broadcast %494 : vector<8x1xf32> to vector<8x64xf32>
    %496 = tpu.concatenate %492, %495 in 1 : vector<8x64xf32>, vector<8x64xf32> -> vector<8x128xf32>
    %c48_186 = arith.constant 48 : index
    %c0_187 = arith.constant 0 : index
    %497 = vector.load %arg7[%c48_186, %c0_187] : memref<128x128xf32, #tpu.memory_space<vmem>>, vector<8x128xf32>
    %498 = arith.mulf %496, %497 : vector<8x128xf32>
    %cst_188 = arith.constant dense<0.000000e+00> : vector<128xf32>
    %499 = vector.multi_reduction <add>, %498, %cst_188 [0] : vector<8x128xf32> to vector<128xf32>
    %500 = vector.shape_cast %499 : vector<128xf32> to vector<1x128xf32>
    %501 = vector.extract_strided_slice %39 {offsets = [0, 7], sizes = [8, 1], strides = [1, 1]} : vector<8x32xf32> to vector<8x1xf32>
    %502 = vector.shape_cast %501 : vector<8x1xf32> to vector<8x1xf32>
    %503 = vector.broadcast %502 : vector<8x1xf32> to vector<8x64xf32>
    %504 = vector.extract_strided_slice %39 {offsets = [0, 23], sizes = [8, 1], strides = [1, 1]} : vector<8x32xf32> to vector<8x1xf32>
    %505 = vector.shape_cast %504 : vector<8x1xf32> to vector<8x1xf32>
    %506 = vector.broadcast %505 : vector<8x1xf32> to vector<8x64xf32>
    %507 = tpu.concatenate %503, %506 in 1 : vector<8x64xf32>, vector<8x64xf32> -> vector<8x128xf32>
    %c56_189 = arith.constant 56 : index
    %c0_190 = arith.constant 0 : index
    %508 = vector.load %arg7[%c56_189, %c0_190] : memref<128x128xf32, #tpu.memory_space<vmem>>, vector<8x128xf32>
    %509 = arith.mulf %507, %508 : vector<8x128xf32>
    %cst_191 = arith.constant dense<0.000000e+00> : vector<128xf32>
    %510 = vector.multi_reduction <add>, %509, %cst_191 [0] : vector<8x128xf32> to vector<128xf32>
    %511 = vector.shape_cast %510 : vector<128xf32> to vector<1x128xf32>
    %512 = vector.extract_strided_slice %39 {offsets = [0, 8], sizes = [8, 1], strides = [1, 1]} : vector<8x32xf32> to vector<8x1xf32>
    %513 = vector.shape_cast %512 : vector<8x1xf32> to vector<8x1xf32>
    %514 = vector.broadcast %513 : vector<8x1xf32> to vector<8x64xf32>
    %515 = vector.extract_strided_slice %39 {offsets = [0, 24], sizes = [8, 1], strides = [1, 1]} : vector<8x32xf32> to vector<8x1xf32>
    %516 = vector.shape_cast %515 : vector<8x1xf32> to vector<8x1xf32>
    %517 = vector.broadcast %516 : vector<8x1xf32> to vector<8x64xf32>
    %518 = tpu.concatenate %514, %517 in 1 : vector<8x64xf32>, vector<8x64xf32> -> vector<8x128xf32>
    %c64_192 = arith.constant 64 : index
    %c0_193 = arith.constant 0 : index
    %519 = vector.load %arg7[%c64_192, %c0_193] : memref<128x128xf32, #tpu.memory_space<vmem>>, vector<8x128xf32>
    %520 = arith.mulf %518, %519 : vector<8x128xf32>
    %cst_194 = arith.constant dense<0.000000e+00> : vector<128xf32>
    %521 = vector.multi_reduction <add>, %520, %cst_194 [0] : vector<8x128xf32> to vector<128xf32>
    %522 = vector.shape_cast %521 : vector<128xf32> to vector<1x128xf32>
    %523 = vector.extract_strided_slice %39 {offsets = [0, 9], sizes = [8, 1], strides = [1, 1]} : vector<8x32xf32> to vector<8x1xf32>
    %524 = vector.shape_cast %523 : vector<8x1xf32> to vector<8x1xf32>
    %525 = vector.broadcast %524 : vector<8x1xf32> to vector<8x64xf32>
    %526 = vector.extract_strided_slice %39 {offsets = [0, 25], sizes = [8, 1], strides = [1, 1]} : vector<8x32xf32> to vector<8x1xf32>
    %527 = vector.shape_cast %526 : vector<8x1xf32> to vector<8x1xf32>
    %528 = vector.broadcast %527 : vector<8x1xf32> to vector<8x64xf32>
    %529 = tpu.concatenate %525, %528 in 1 : vector<8x64xf32>, vector<8x64xf32> -> vector<8x128xf32>
    %c72_195 = arith.constant 72 : index
    %c0_196 = arith.constant 0 : index
    %530 = vector.load %arg7[%c72_195, %c0_196] : memref<128x128xf32, #tpu.memory_space<vmem>>, vector<8x128xf32>
    %531 = arith.mulf %529, %530 : vector<8x128xf32>
    %cst_197 = arith.constant dense<0.000000e+00> : vector<128xf32>
    %532 = vector.multi_reduction <add>, %531, %cst_197 [0] : vector<8x128xf32> to vector<128xf32>
    %533 = vector.shape_cast %532 : vector<128xf32> to vector<1x128xf32>
    %534 = vector.extract_strided_slice %39 {offsets = [0, 10], sizes = [8, 1], strides = [1, 1]} : vector<8x32xf32> to vector<8x1xf32>
    %535 = vector.shape_cast %534 : vector<8x1xf32> to vector<8x1xf32>
    %536 = vector.broadcast %535 : vector<8x1xf32> to vector<8x64xf32>
    %537 = vector.extract_strided_slice %39 {offsets = [0, 26], sizes = [8, 1], strides = [1, 1]} : vector<8x32xf32> to vector<8x1xf32>
    %538 = vector.shape_cast %537 : vector<8x1xf32> to vector<8x1xf32>
    %539 = vector.broadcast %538 : vector<8x1xf32> to vector<8x64xf32>
    %540 = tpu.concatenate %536, %539 in 1 : vector<8x64xf32>, vector<8x64xf32> -> vector<8x128xf32>
    %c80_198 = arith.constant 80 : index
    %c0_199 = arith.constant 0 : index
    %541 = vector.load %arg7[%c80_198, %c0_199] : memref<128x128xf32, #tpu.memory_space<vmem>>, vector<8x128xf32>
    %542 = arith.mulf %540, %541 : vector<8x128xf32>
    %cst_200 = arith.constant dense<0.000000e+00> : vector<128xf32>
    %543 = vector.multi_reduction <add>, %542, %cst_200 [0] : vector<8x128xf32> to vector<128xf32>
    %544 = vector.shape_cast %543 : vector<128xf32> to vector<1x128xf32>
    %545 = vector.extract_strided_slice %39 {offsets = [0, 11], sizes = [8, 1], strides = [1, 1]} : vector<8x32xf32> to vector<8x1xf32>
    %546 = vector.shape_cast %545 : vector<8x1xf32> to vector<8x1xf32>
    %547 = vector.broadcast %546 : vector<8x1xf32> to vector<8x64xf32>
    %548 = vector.extract_strided_slice %39 {offsets = [0, 27], sizes = [8, 1], strides = [1, 1]} : vector<8x32xf32> to vector<8x1xf32>
    %549 = vector.shape_cast %548 : vector<8x1xf32> to vector<8x1xf32>
    %550 = vector.broadcast %549 : vector<8x1xf32> to vector<8x64xf32>
    %551 = tpu.concatenate %547, %550 in 1 : vector<8x64xf32>, vector<8x64xf32> -> vector<8x128xf32>
    %c88_201 = arith.constant 88 : index
    %c0_202 = arith.constant 0 : index
    %552 = vector.load %arg7[%c88_201, %c0_202] : memref<128x128xf32, #tpu.memory_space<vmem>>, vector<8x128xf32>
    %553 = arith.mulf %551, %552 : vector<8x128xf32>
    %cst_203 = arith.constant dense<0.000000e+00> : vector<128xf32>
    %554 = vector.multi_reduction <add>, %553, %cst_203 [0] : vector<8x128xf32> to vector<128xf32>
    %555 = vector.shape_cast %554 : vector<128xf32> to vector<1x128xf32>
    %556 = vector.extract_strided_slice %39 {offsets = [0, 12], sizes = [8, 1], strides = [1, 1]} : vector<8x32xf32> to vector<8x1xf32>
    %557 = vector.shape_cast %556 : vector<8x1xf32> to vector<8x1xf32>
    %558 = vector.broadcast %557 : vector<8x1xf32> to vector<8x64xf32>
    %559 = vector.extract_strided_slice %39 {offsets = [0, 28], sizes = [8, 1], strides = [1, 1]} : vector<8x32xf32> to vector<8x1xf32>
    %560 = vector.shape_cast %559 : vector<8x1xf32> to vector<8x1xf32>
    %561 = vector.broadcast %560 : vector<8x1xf32> to vector<8x64xf32>
    %562 = tpu.concatenate %558, %561 in 1 : vector<8x64xf32>, vector<8x64xf32> -> vector<8x128xf32>
    %c96_204 = arith.constant 96 : index
    %c0_205 = arith.constant 0 : index
    %563 = vector.load %arg7[%c96_204, %c0_205] : memref<128x128xf32, #tpu.memory_space<vmem>>, vector<8x128xf32>
    %564 = arith.mulf %562, %563 : vector<8x128xf32>
    %cst_206 = arith.constant dense<0.000000e+00> : vector<128xf32>
    %565 = vector.multi_reduction <add>, %564, %cst_206 [0] : vector<8x128xf32> to vector<128xf32>
    %566 = vector.shape_cast %565 : vector<128xf32> to vector<1x128xf32>
    %567 = vector.extract_strided_slice %39 {offsets = [0, 13], sizes = [8, 1], strides = [1, 1]} : vector<8x32xf32> to vector<8x1xf32>
    %568 = vector.shape_cast %567 : vector<8x1xf32> to vector<8x1xf32>
    %569 = vector.broadcast %568 : vector<8x1xf32> to vector<8x64xf32>
    %570 = vector.extract_strided_slice %39 {offsets = [0, 29], sizes = [8, 1], strides = [1, 1]} : vector<8x32xf32> to vector<8x1xf32>
    %571 = vector.shape_cast %570 : vector<8x1xf32> to vector<8x1xf32>
    %572 = vector.broadcast %571 : vector<8x1xf32> to vector<8x64xf32>
    %573 = tpu.concatenate %569, %572 in 1 : vector<8x64xf32>, vector<8x64xf32> -> vector<8x128xf32>
    %c104_207 = arith.constant 104 : index
    %c0_208 = arith.constant 0 : index
    %574 = vector.load %arg7[%c104_207, %c0_208] : memref<128x128xf32, #tpu.memory_space<vmem>>, vector<8x128xf32>
    %575 = arith.mulf %573, %574 : vector<8x128xf32>
    %cst_209 = arith.constant dense<0.000000e+00> : vector<128xf32>
    %576 = vector.multi_reduction <add>, %575, %cst_209 [0] : vector<8x128xf32> to vector<128xf32>
    %577 = vector.shape_cast %576 : vector<128xf32> to vector<1x128xf32>
    %578 = vector.extract_strided_slice %39 {offsets = [0, 14], sizes = [8, 1], strides = [1, 1]} : vector<8x32xf32> to vector<8x1xf32>
    %579 = vector.shape_cast %578 : vector<8x1xf32> to vector<8x1xf32>
    %580 = vector.broadcast %579 : vector<8x1xf32> to vector<8x64xf32>
    %581 = vector.extract_strided_slice %39 {offsets = [0, 30], sizes = [8, 1], strides = [1, 1]} : vector<8x32xf32> to vector<8x1xf32>
    %582 = vector.shape_cast %581 : vector<8x1xf32> to vector<8x1xf32>
    %583 = vector.broadcast %582 : vector<8x1xf32> to vector<8x64xf32>
    %584 = tpu.concatenate %580, %583 in 1 : vector<8x64xf32>, vector<8x64xf32> -> vector<8x128xf32>
    %c112_210 = arith.constant 112 : index
    %c0_211 = arith.constant 0 : index
    %585 = vector.load %arg7[%c112_210, %c0_211] : memref<128x128xf32, #tpu.memory_space<vmem>>, vector<8x128xf32>
    %586 = arith.mulf %584, %585 : vector<8x128xf32>
    %cst_212 = arith.constant dense<0.000000e+00> : vector<128xf32>
    %587 = vector.multi_reduction <add>, %586, %cst_212 [0] : vector<8x128xf32> to vector<128xf32>
    %588 = vector.shape_cast %587 : vector<128xf32> to vector<1x128xf32>
    %589 = vector.extract_strided_slice %39 {offsets = [0, 15], sizes = [8, 1], strides = [1, 1]} : vector<8x32xf32> to vector<8x1xf32>
    %590 = vector.shape_cast %589 : vector<8x1xf32> to vector<8x1xf32>
    %591 = vector.broadcast %590 : vector<8x1xf32> to vector<8x64xf32>
    %592 = vector.extract_strided_slice %39 {offsets = [0, 31], sizes = [8, 1], strides = [1, 1]} : vector<8x32xf32> to vector<8x1xf32>
    %593 = vector.shape_cast %592 : vector<8x1xf32> to vector<8x1xf32>
    %594 = vector.broadcast %593 : vector<8x1xf32> to vector<8x64xf32>
    %595 = tpu.concatenate %591, %594 in 1 : vector<8x64xf32>, vector<8x64xf32> -> vector<8x128xf32>
    %c120_213 = arith.constant 120 : index
    %c0_214 = arith.constant 0 : index
    %596 = vector.load %arg7[%c120_213, %c0_214] : memref<128x128xf32, #tpu.memory_space<vmem>>, vector<8x128xf32>
    %597 = arith.mulf %595, %596 : vector<8x128xf32>
    %cst_215 = arith.constant dense<0.000000e+00> : vector<128xf32>
    %598 = vector.multi_reduction <add>, %597, %cst_215 [0] : vector<8x128xf32> to vector<128xf32>
    %599 = vector.shape_cast %598 : vector<128xf32> to vector<1x128xf32>
    %600 = tpu.concatenate %434, %445, %456, %467, %478, %489, %500, %511, %522, %533, %544, %555, %566, %577, %588, %599 in 0 : vector<1x128xf32>, vector<1x128xf32>, vector<1x128xf32>, vector<1x128xf32>, vector<1x128xf32>, vector<1x128xf32>, vector<1x128xf32>, vector<1x128xf32>, vector<1x128xf32>, vector<1x128xf32>, vector<1x128xf32>, vector<1x128xf32>, vector<1x128xf32>, vector<1x128xf32>, vector<1x128xf32>, vector<1x128xf32> -> vector<16x128xf32>
    %601 = arith.addf %600, %54 : vector<16x128xf32>
    %cst_216 = arith.constant 5.000000e-01 : f32
    %602 = vector.broadcast %cst_216 : f32 to vector<16x128xf32>
    %603 = arith.mulf %602, %48 : vector<16x128xf32>
    %cst_217 = arith.constant 5.000000e-01 : f32
    %604 = vector.broadcast %cst_217 : f32 to vector<16x128xf32>
    %605 = arith.mulf %604, %48 : vector<16x128xf32>
    %606 = math.tanh %605 : vector<16x128xf32>
    %cst_218 = arith.constant 1.000000e+00 : f32
    %607 = vector.broadcast %cst_218 : f32 to vector<16x128xf32>
    %608 = arith.addf %607, %606 : vector<16x128xf32>
    %609 = arith.mulf %603, %608 : vector<16x128xf32>
    %610 = arith.mulf %601, %609 : vector<16x128xf32>
    %cst_219 = arith.constant dense<0.000000e+00> : vector<16x64xf32>
    %611 = tpu.matmul %610, %5, %cst_219 {dimension_numbers = #tpu.dot_dimension_numbers<[1], [0], [0], [1], [0, 0, 1, 1], [], []>} : vector<16x128xf32>, vector<128x64xf32>, vector<16x64xf32> -> vector<16x64xf32>
    %c0_220 = arith.constant 0 : index
    %c0_221 = arith.constant 0 : index
    %612 = vector.load %arg3[%c0_220, %c0_221] : memref<1x64xf32, #tpu.memory_space<vmem>>, vector<1x64xf32>
    %613 = vector.broadcast %612 : vector<1x64xf32> to vector<16x64xf32>
    %614 = arith.mulf %611, %613 : vector<16x64xf32>
    %615 = arith.addf %51, %614 : vector<16x64xf32>
    %c0_222 = arith.constant 0 : index
    %c0_223 = arith.constant 0 : index
    %616 = vector.load %arg4[%c0_222, %c0_223] : memref<16x64xf32, #tpu.memory_space<vmem>>, vector<16x64xf32>
    tpu.vector_store %arg4[%c0_222, %c0_223], %615 {strides = array<i32>} : memref<16x64xf32, #tpu.memory_space<vmem>>, vector<16x64xf32>,
    return
  }
  func.func @transform_0(%arg0: i32) -> (i32, i32) {
    %c0_i32 = arith.constant 0 : i32
    %c0_i32_0 = arith.constant 0 : i32
    %c0_i32_1 = arith.constant 0 : i32
    return %c0_i32, %c0_i32_0 : i32, i32
  }
  func.func @transform_1(%arg0: i32) -> (i32, i32) {
    %c0_i32 = arith.constant 0 : i32
    %c0_i32_0 = arith.constant 0 : i32
    %c0_i32_1 = arith.constant 0 : i32
    return %c0_i32, %c0_i32_0 : i32, i32
  }
  func.func @transform_2(%arg0: i32) -> (i32, i32) {
    %c0_i32 = arith.constant 0 : i32
    %c0_i32_0 = arith.constant 0 : i32
    %c0_i32_1 = arith.constant 0 : i32
    return %c0_i32, %c0_i32_0 : i32, i32
  }
  func.func @transform_3(%arg0: i32) -> (i32, i32) {
    %c0_i32 = arith.constant 0 : i32
    %c0_i32_0 = arith.constant 0 : i32
    %c0_i32_1 = arith.constant 0 : i32
    return %c0_i32, %c0_i32_0 : i32, i32
  }
}

</mosaic_0001>

<bundles_post_ra>
// kernel: mamba_encoder_forward.1
= control target key start
LH: loop header
LB: loop body
LE: loop exit
PB: predicated region body
PF: predicated region fallthrough
CT: control target
= control target key end

     0   :  { %vm102_vm0 = vcmask 261120   ;;  %s1214_s17 = smov 32   ;;  %vm190_vm1 = vcmask 523264   ;;  %s1215_s5 = smov 64   ;;  %vm964_vm2 = vcmask 1040384   ;;  %vm966_vm3 = vcmask 1041408   ;;  %s1973_s1 = inlined_call_operand.vmem [shape: f32[416,128], index: 1, kind: input, shape index: {}]   ;;  %s1974_s0 = inlined_call_operand.vmem [shape: f32[32,128], index: 0, kind: input, shape index: {}]   ;;  %s1975_s2 = inlined_call_operand.vmem [shape: f32[1,64], index: 2, kind: input, shape index: {}]   ;;  %s1976_s3 = inlined_call_operand.vmem [shape: f32[16,64], index: 3, kind: output, shape index: {}]  }
   0x1   :  { %v29_v0 = vld [vmem:[%s1973_s1 + $0x78] sm:$0xff]  ;;  %v28_v1 = vld [vmem:[%s1973_s1 + $0x70] sm:$0xff]  ;;  %v27_v2 = vld [vmem:[%s1973_s1 + $0x68] sm:$0xff]  ;;  %vm968_vm4 = vcmask 1042432   ;;  %vm970_vm5 = vcmask 1043456   ;;  %vm972_vm6 = vcmask 1044480  }
   0x2   :  { %73 = vmatpush.msra.mxu0 %v29_v0  ;;  %v26_v3 = vld [vmem:[%s1973_s1 + $0x60] sm:$0xff]  ;;  %v25_v4 = vld [vmem:[%s1973_s1 + $0x58] sm:$0xff]  ;;  %v24_v5 = vld [vmem:[%s1973_s1 + $0x50] sm:$0xff]  ;;  %vm974_vm7 = vcmask 1045504   ;;  %vm976_vm8 = vcmask 1046528  }
   0x3   :  { %v23_v6 = vld [vmem:[%s1973_s1 + $0x48] sm:$0xff]  ;;  %v22_v7 = vld [vmem:[%s1973_s1 + $0x40] sm:$0xff]  ;;  %v21_v8 = vld [vmem:[%s1973_s1 + $0x38] sm:$0xff] }
   0x4   :  { %74 = vmatpush.msra.mxu0 %v28_v1  ;;  %v20_v9 = vld [vmem:[%s1973_s1 + $0x30] sm:$0xff]  ;;  %v19_v10 = vld [vmem:[%s1973_s1 + $0x28] sm:$0xff]  ;;  %v18_v11 = vld [vmem:[%s1973_s1 + $0x20] sm:$0xff] }
   0x5   :  { %v17_v12 = vld [vmem:[%s1973_s1 + $0x18] sm:$0xff]  ;;  %v16_v13 = vld [vmem:[%s1973_s1 + $0x10] sm:$0xff]  ;;  %v15_v18 = vld [vmem:[%s1973_s1 + $0x8] sm:$0xff] }
   0x6   :  { %75 = vmatpush.msra.mxu0 %v27_v2  ;;  %v33_v14 = vld [vmem:[%s1973_s1 + $0x98] sm:$0xff]  ;;  %v32_v16 = vld [vmem:[%s1973_s1 + $0x90] sm:$0xff]  ;;  %v14_v19 = vld [vmem:[%s1973_s1] sm:$0xff] }
   0x7   :  { %v37_v15 = vld [vmem:[%s1973_s1 + $0xb8] sm:$0xff]  ;;  %127 = vmatpush.msra.mxu1 %v33_v14  ;;  %v36_v17 = vld [vmem:[%s1973_s1 + $0xb0] sm:$0xff]  ;;  %v68_v20 = vld [vmem:[%s1974_s0] sm:$0xff] }
   0x8   :  { %76 = vmatpush.msra.mxu0 %v26_v3  ;;  %172 = vmatpush.msra.mxu2 %v37_v15  ;;  %v69_v21 = vld [vmem:[%s1974_s0 + $0x8] sm:$0xff]  ;;  %v70_v22 = vld [vmem:[%s1974_s0 + $0x10] sm:$0xff]  ;;  %v71_v23 = vld [vmem:[%s1974_s0 + $0x18] sm:$0xff] }
   0x9   :  { %128 = vmatpush.msra.mxu1 %v32_v16  ;;  %v31_v24 = vld [vmem:[%s1973_s1 + $0x88] sm:$0xff]  ;;  %v30_v26 = vld [vmem:[%s1973_s1 + $0x80] sm:$0xff]  ;;  %v45_v28 = vld [vmem:[%s1973_s1 + $0xf8] sm:$0xff]  ;;  %v1219_v16 = vmov 2  }
   0xa   :  { %77 = vmatpush.msra.mxu0 %v25_v4  ;;  %173 = vmatpush.msra.mxu2 %v36_v17  ;;  %v35_v25 = vld [vmem:[%s1973_s1 + $0xa8] sm:$0xff]  ;;  %v34_v27 = vld [vmem:[%s1973_s1 + $0xa0] sm:$0xff]  ;;  %v1150_v29 = vld [vmem:[%s1973_s1 + $0x198] ss:$0 sm:$0xff]  ;;  %v1220_v17 = vmov 3  }
   0xb   :  { %129 = vmatpush.msra.mxu1 %v31_v24  ;;  %211 = vmatpush.msra.mxu3 %v45_v28  ;;  %v44_v38 = vld [vmem:[%s1973_s1 + $0xf0] sm:$0xff]  ;;  %v43_v39 = vld [vmem:[%s1973_s1 + $0xe8] sm:$0xff]  ;;  %v42_v40 = vld [vmem:[%s1973_s1 + $0xe0] sm:$0xff]  ;;  %v1227_v24 = vmov 4  }
   0xc   :  { %78 = vmatpush.msra.mxu0 %v24_v5  ;;  %174 = vmatpush.msra.mxu2 %v35_v25  ;;  %v41_v41 = vld [vmem:[%s1973_s1 + $0xd8] sm:$0xff]  ;;  %v40_v42 = vld [vmem:[%s1973_s1 + $0xd0] sm:$0xff]  ;;  %v39_v43 = vld [vmem:[%s1973_s1 + $0xc8] sm:$0xff]  ;;  %v1228_v25 = vmov 6  }
   0xd   :  { %130 = vmatpush.msra.mxu1 %v30_v26  ;;  %212 = vmatpush.msra.mxu3 %v44_v38  ;;  %v38_v44 = vld [vmem:[%s1973_s1 + $0xc0] sm:$0xff]  ;;  %v1229_v26 = vmov 13   ;;  %v1237_v38 = vmov 11  }
   0xe   :  { %79 = vmatpush.msra.mxu0 %v23_v6  ;;  %175 = vmatpush.msra.mxu2 %v34_v27  ;;  %v46_v5 = vld [vmem:[%s1973_s1 + $0x100] sm:$0xff]  ;;  %v47_v6 = vld [vmem:[%s1973_s1 + $0x108] sm:$0xff]  ;;  %v1230_v27 = vmov 5  }
   0xf   :  { %213 = vmatpush.msra.mxu3 %v43_v39  ;;  %v1238_v39 = vmov 10  }
  0x10   :  { %80 = vmatpush.msra.mxu0 %v22_v7  ;;  %v1430_v7 = vld [vmem:[%s1973_s1 + $0x199] ss:$0 sm:$0xff] }
  0x11   :  { %214 = vmatpush.msra.mxu3 %v42_v40 }
  0x12   :  { %81 = vmatpush.msra.mxu0 %v21_v8 }
  0x13   :  { %215 = vmatpush.msra.mxu3 %v41_v41  ;;  %v1239_v41 = vmov 12  }
  0x14   :  { %82 = vmatpush.msra.mxu0 %v20_v9 }
  0x15   :  { %216 = vmatpush.msra.mxu3 %v40_v42  ;;  %v1240_v42 = vmov 27  }
  0x16   :  { %83 = vmatpush.msra.mxu0 %v19_v10  ;;  %v1216_v10 = vmov 1  }
  0x17   :  { %217 = vmatpush.msra.mxu3 %v39_v43  ;;  %1088 = vset.pattern.permute.xlu1 %v1216_v10  ;;  %v1241_v43 = vmov 26  }
  0x18   :  { %84 = vmatpush.msra.mxu0 %v18_v11  ;;  %v1217_v11 = vmov 16  }
  0x19   :  { %218 = vmatpush.msra.mxu3 %v38_v44  ;;  %1087 = vset.pattern.permute.xlu0 %v1217_v11 }
  0x1a   :  { %85 = vmatpush.msra.mxu0 %v17_v12  ;;  %v1218_v12 = vmov 0  }
  0x1b   :  { %1086 = vset.pattern.permute.xlu2 %v1218_v12 }
  0x1c   :  { %86 = vmatpush.msra.mxu0 %v16_v13 }
  0x1e   :  { %87 = vmatpush.msra.mxu0 %v15_v18  ;;  %v1221_v18 = vmov 17  }
  0x20   :  { %88 = vmatpush.msra.mxu0 %v14_v19  ;;  %v1222_v19 = vmov 19  }
  0x21   :  { %89 = vmatmul.f32.vlgmr.msra.gmra.mxu0 %v68_v20  ;;  %v1223_v20 = vmov 21  }
  0x29   :  { %92 = vmatmul.f32.gmra.mxu0 %v69_v21  ;;  %v1224_v21 = vmov 18  }
  0x31   :  { %95 = vmatmul.f32.gmra.mxu0 %v70_v22  ;;  %v1225_v22 = vmov 20  }
  0x39   :  { %98 = vmatmul.f32.gmra.mxu0 %v71_v23  ;;  %v1226_v23 = vmov 8  }
  0x9e   :  { %v90_v30 = vpop.f32.mrf.mxu0 }
  0x9f   :  { %v1358_v31 = vadd.f32 %v1150_v29, %v90_v30  ;;  %v1232_v30 = vmov 22  }
  0xa1   :  { %1034 = vmatmul.msk.f32.vlgmr.msra.gmra.mxu1 %vm102_vm0, %v1358_v31  ;;  %1038 = vmatmul.msk.f32.vlgmr.msra.gmra.mxu2 %vm102_vm0, %v1358_v31 }
  0xa6   :  { %v93_v32 = vpop.f32.mrf.mxu0 }
  0xa7   :  { %v1364_v33 = vadd.f32 %v1150_v29, %v93_v32  ;;  %v1233_v32 = vmov 24  }
  0xa9   :  { %1978 = vst [vmem:[#allocation5_spill] sm:$0xff] %v1364_v33  ;;  %1035 = vmatmul.msk.f32.gmra.mxu1 %vm102_vm0, %v1364_v33  ;;  %1039 = vmatmul.msk.f32.gmra.mxu2 %vm102_vm0, %v1364_v33 }
  0xae   :  { %v96_v34 = vpop.f32.mrf.mxu0 }
  0xaf   :  { %v97_v35 = vadd.f32 %v1150_v29, %v96_v34  ;;  %v1234_v34 = vmov 23  }
  0xb1   :  { %325 = vrot.lane.b32.xlu0 %v97_v35, %s1214_s17  ;;  %1036 = vmatmul.msk.f32.gmra.mxu1 %vm102_vm0, %v97_v35 }
  0xb2   :  { %1040 = vmatmul.msk.f32.gmra.mxu2 %vm102_vm0, %v97_v35  ;;  %v1235_v35 = vmov 25  }
  0xb6   :  { %v99_v36 = vpop.f32.mrf.mxu0 }
  0xb7   :  { %v100_v37 = vadd.f32 %v1150_v29, %v99_v36  ;;  %v1231_v29 = vmov 7   ;;  %v1236_v36 = vmov 9  }
  0xb9   :  { %327 = vrot.lane.b32.xlu1 %v100_v37, %s1214_s17  ;;  %1037 = vmatmul.msk.f32.gmra.mxu1 %vm102_vm0, %v100_v37 }
  0xba   :  { %1041 = vmatmul.msk.f32.gmra.mxu2 %vm102_vm0, %v100_v37 }
 0x11e   :  { %v132_v45 = vpop.f32.mrf.mxu1 }
 0x11f   :  { %v144_v46 = vmul.f32 0.5, %v132_v45  ;;  %v1242_v45 = vmov 29  }
 0x121   :  { %1154 = vtanh.f32 %v144_v46 }
 0x124   :  { %v1395_v47 = vpop.f32.mrf.mxu2 }
 0x126   :  { %v135_v48 = vpop.f32.mrf.mxu1 }
 0x127   :  { %v1155_v49 = vpop.eup %1154  ;;  %v145_v50 = vmul.f32 0.5, %v135_v48 }
 0x128   :  { %v152_v51 = vadd.f32 1.0, %v1155_v49  ;;  %v1244_v49 = vmov 30  }
 0x129   :  { %1156 = vtanh.f32 %v145_v50 }
 0x12a   :  { %v1397_v52 = vmul.f32 %v152_v51, %v144_v46  ;;  %v1243_v46 = vmov 28  }
 0x12c   :  { %v1399_v53 = vpop.f32.mrf.mxu2  ;;  %1042 = vmatmul.msk.f32.vlgmr.msra.gmra.mxu3 %vm190_vm1, %v1397_v52 }
 0x12e   :  { %v138_v54 = vpop.f32.mrf.mxu1 }
 0x12f   :  { %v1157_v55 = vpop.eup %1156  ;;  %v146_v56 = vmul.f32 0.5, %v138_v54  ;;  %v1245_v54 = vmov 14  }
 0x130   :  { %v153_v57 = vadd.f32 1.0, %v1157_v55  ;;  %v1508_v55 = vpop.permute.xlu1 %327 }
 0x131   :  { %1158 = vtanh.f32 %v146_v56  ;;  %1979 = vst [vmem:[#allocation6_spill] sm:$0xff] %v1508_v55 }
 0x132   :  { %v1403_v58 = vmul.f32 %v153_v57, %v145_v50 }
 0x134   :  { %1043 = vmatmul.msk.f32.gmra.mxu3 %vm190_vm1, %v1403_v58 }
 0x135   :  { %v183_v59 = vpop.f32.mrf.mxu2 }
 0x136   :  { %317 = vrot.lane.b32.xlu2 %v183_v59, %s1215_s5  ;;  %v141_v60 = vpop.f32.mrf.mxu1 }
 0x137   :  { %v1159_v61 = vpop.eup %1158  ;;  %v147_v62 = vmul.f32 0.5, %v141_v60 }
 0x138   :  { %v154_v63 = vadd.f32 1.0, %v1159_v61 }
 0x139   :  { %1160 = vtanh.f32 %v147_v62 }
 0x13a   :  { %v158_v0 = vmul.f32 %v154_v63, %v146_v56 }
 0x13c   :  { %297 = vrot.lane.b32.xlu0 %v158_v0, %s1215_s5  ;;  %1044 = vmatmul.msk.f32.gmra.mxu3 %vm190_vm1, %v158_v0 }
 0x13d   :  { %v186_v1 = vpop.f32.mrf.mxu2 }
 0x13e   :  { %319 = vrot.lane.b32.xlu2 %v186_v1, %s1215_s5 }
 0x13f   :  { %v1161_v2 = vpop.eup %1160 }
 0x140   :  { %v155_v3 = vadd.f32 1.0, %v1161_v2 }
 0x142   :  { %v159_v4 = vmul.f32 %v155_v3, %v147_v62 }
 0x144   :  { %299 = vrot.lane.b32.xlu0 %v159_v4, %s1215_s5  ;;  %1045 = vmatmul.msk.f32.gmra.mxu3 %vm190_vm1, %v159_v4 }
 0x145   :  { %1046 = vmatpush.xpose.msk.msrb.mxu1 %vm190_vm1, %v159_v4 }
 0x149   :  { %1047 = vmatpush.xpose.msk.msrb.mxu1 %vm190_vm1, %v158_v0 }
 0x14d   :  { %1048 = vmatpush.xpose.msk.msrb.mxu1 %vm190_vm1, %v1403_v58 }
 0x151   :  { %1049 = vmatpush.xpose.msk.msrb.mxu1 %vm190_vm1, %v1397_v52 }
 0x154   :  { %1050 = vmatmul.msk.f32.vlgmr.msrb.gmra.mxu1 %vm190_vm1, %v46_v5 }
 0x15c   :  { %1051 = vmatmul.msk.f32.gmra.mxu1 %vm190_vm1, %v47_v6 }
 0x190   :  { %v1483_v37 = vpop.permute.xlu2 %317 }
 0x198   :  { %v1490_v40 = vpop.permute.xlu2 %319 }
 0x1af   :  { %v220_v8 = vpop.f32.mrf.mxu3 }
 0x1b0   :  { %v1433_v9 = vadd.f32 %v1430_v7, %v220_v8 }
 0x1b7   :  { %v223_v13 = vpop.f32.mrf.mxu3 }
 0x1b8   :  { %v1438_v14 = vadd.f32 %v1430_v7, %v223_v13 }
 0x1bf   :  { %v226_v48 = vpop.f32.mrf.mxu3 }
 0x1c0   :  { %v227_v51 = vadd.f32 %v1430_v7, %v226_v48 }
 0x1c2   :  { %v238_v56 = vand.u32 2147483647, %v227_v51 }
 0x1c4   :  { %v242_v57 = vsub.f32 0.0, %v238_v56 }
 0x1c6   :  { %v248_v61 = vmul.f32 1.442695, %v242_v57 }
 0x1c7   :  { %v229_v6 = vpop.f32.mrf.mxu3 }
 0x1c8   :  { %1162 = vpow2.f32 %v248_v61  ;;  %v230_v8 = vadd.f32 %v1430_v7, %v229_v6 }
 0x1ca   :  { %v235_v56 = vmax.f32 %v230_v8, 0.0 }
 0x1ce   :  { %v1163_v2 = vpop.eup %1162 }
 0x1cf   :  { %v254_v3 = vadd.f32 1.0, %v1163_v2  ;;  %v1247_v2 = vmov 15  }
 0x1d1   :  { %v1440_v15 = vpop.f32.mrf.mxu1  ;;  %1164 = vlog2.f32 %v254_v3 }
 0x1d2   :  { %359 = vperm.xlu1 %1088, %v1440_v15   ;;  %346 = vperm.xlu0 %1087, %v1440_v15  }
 0x1d3   :  { %342 = vperm.xlu2 %1086, %v1440_v15  }
 0x1d9   :  { %v1466_v28 = vpop.f32.mrf.mxu1 }
 0x1da   :  { %1090 = vset.pattern.permute.xlu1 %v1219_v16  ;;  %1092 = vset.pattern.permute.xlu0 %v1220_v17 }
 0x1db   :  { %1089 = vset.pattern.permute.xlu2 %v1221_v18  ;;  %376 = vperm.xlu1 %1090, %v1440_v15  }
 0x1dc   :  { %393 = vperm.xlu0 %1092, %v1440_v15   ;;  %363 = vperm.xlu2 %1089, %v1440_v15  }
 0x1e3   :  { %1093 = vset.pattern.permute.xlu1 %v1222_v19 }
 0x1e4   :  { %1097 = vset.pattern.permute.xlu0 %v1223_v20  ;;  %1091 = vset.pattern.permute.xlu2 %v1224_v21 }
 0x1e5   :  { %397 = vperm.xlu1 %1093, %v1440_v15   ;;  %431 = vperm.xlu0 %1097, %v1440_v15  }
 0x1e6   :  { %380 = vperm.xlu2 %1091, %v1440_v15  }
 0x1ed   :  { %1095 = vset.pattern.permute.xlu1 %v1225_v22  ;;  %1102 = vset.pattern.permute.xlu0 %v1226_v23 }
 0x1ee   :  { %1094 = vset.pattern.permute.xlu2 %v1227_v24  ;;  %414 = vperm.xlu1 %1095, %v1440_v15  }
 0x1ef   :  { %478 = vperm.xlu0 %1102, %v1440_v15   ;;  %410 = vperm.xlu2 %1094, %v1440_v15  }
 0x1f6   :  { %1098 = vset.pattern.permute.xlu1 %v1228_v25 }
 0x1f7   :  { %1111 = vset.pattern.permute.xlu0 %v1229_v26  ;;  %1096 = vset.pattern.permute.xlu2 %v1230_v27 }
 0x1f8   :  { %444 = vperm.xlu1 %1098, %v1440_v15   ;;  %563 = vperm.xlu0 %1111, %v1440_v15  }
 0x1f9   :  { %427 = vperm.xlu2 %1096, %v1440_v15  }
 0x200   :  { %1100 = vset.pattern.permute.xlu1 %v1231_v29  ;;  %1116 = vset.pattern.permute.xlu0 %v1217_v11  ;;  %v239_v11 = vand.u32 2147483647, %v230_v8 }
 0x201   :  { %1099 = vset.pattern.permute.xlu2 %v1232_v30  ;;  %461 = vperm.xlu1 %1100, %v1440_v15  }
 0x202   :  { %448 = vperm.xlu2 %1099, %v1440_v15   ;;  %697 = vperm.xlu0 %1116, %v1466_v28  }
 0x209   :  { %1103 = vset.pattern.permute.xlu1 %v1233_v32 }
 0x20a   :  { %1101 = vset.pattern.permute.xlu2 %v1234_v34  ;;  %1121 = vset.pattern.permute.xlu0 %v1220_v17  ;;  %v234_v17 = vmax.f32 %v227_v51, 0.0 }
 0x20b   :  { %482 = vperm.xlu1 %1103, %v1440_v15   ;;  %465 = vperm.xlu2 %1101, %v1440_v15  }
 0x20c   :  { %744 = vperm.xlu0 %1121, %v1466_v28  }
 0x213   :  { %1105 = vset.pattern.permute.xlu1 %v1235_v35  ;;  %1104 = vset.pattern.permute.xlu2 %v1236_v36 }
 0x214   :  { %1126 = vset.pattern.permute.xlu0 %v1223_v20  ;;  %499 = vperm.xlu1 %1105, %v1440_v15  }
 0x215   :  { %495 = vperm.xlu2 %1104, %v1440_v15   ;;  %782 = vperm.xlu0 %1126, %v1466_v28  }
 0x21c   :  { %1107 = vset.pattern.permute.xlu1 %v1237_v38 }
 0x21d   :  { %1106 = vset.pattern.permute.xlu2 %v1238_v39  ;;  %1131 = vset.pattern.permute.xlu0 %v1226_v23 }
 0x21e   :  { %529 = vperm.xlu1 %1107, %v1440_v15   ;;  %512 = vperm.xlu2 %1106, %v1440_v15  }
 0x21f   :  { %829 = vperm.xlu0 %1131, %v1466_v28  }
 0x226   :  { %1109 = vset.pattern.permute.xlu1 %v1239_v41  ;;  %1108 = vset.pattern.permute.xlu2 %v1240_v42 }
 0x227   :  { %1132 = vset.pattern.permute.xlu0 %v1241_v43  ;;  %546 = vperm.xlu1 %1109, %v1440_v15  }
 0x228   :  { %533 = vperm.xlu2 %1108, %v1440_v15   ;;  %516 = vperm.xlu0 %1132, %v1440_v15  }
 0x22d   :  { %v1496_v44 = vpop.permute.xlu2 %342 }
 0x22f   :  { %1112 = vset.pattern.permute.xlu1 %v1242_v45 }
 0x230   :  { %1110 = vset.pattern.permute.xlu2 %v1243_v46  ;;  %567 = vperm.xlu1 %1112, %v1440_v15  }
 0x231   :  { %550 = vperm.xlu2 %1110, %v1440_v15   ;;  %867 = vperm.xlu0 %1132, %v1466_v28  }
 0x236   :  { %v364_v50 = vpop.permute.xlu2 %363 }
 0x238   :  { %1114 = vset.pattern.permute.xlu1 %v1244_v49 }
 0x239   :  { %1113 = vset.pattern.permute.xlu2 %v1245_v54  ;;  %584 = vperm.xlu1 %1114, %v1440_v15  }
 0x23a   :  { %580 = vperm.xlu2 %1113, %v1440_v15   ;;  %1141 = vset.pattern.permute.xlu0 %v1239_v41  ;;  %v1246_v41 = vmov 31  }
 0x23b   :  { %897 = vperm.xlu0 %1141, %v1466_v28  }
 0x240   :  { %v381_v59 = vpop.permute.xlu2 %380 }
 0x241   :  { %1117 = vset.pattern.permute.xlu1 %v1216_v10  ;;  %v1165_v10 = vpop.eup %1164 }
 0x242   :  { %1115 = vset.pattern.permute.xlu2 %v1218_v12  ;;  %710 = vperm.xlu1 %1117, %v1466_v28   ;;  %v261_v12 = vmul.f32 0.6931472, %v1165_v10 }
 0x243   :  { %693 = vperm.xlu2 %1115, %v1466_v28   ;;  %1146 = vset.pattern.permute.xlu0 %v1244_v49 }
 0x244   :  { %v360_v60 = vpop.permute.xlu1 %359  ;;  %935 = vperm.xlu0 %1146, %v1466_v28   ;;  %v266_v20 = vadd.f32 %v261_v12, %v234_v17 }
 0x245   :  { %v1516_v62 = vsel %vm190_vm1, %v360_v60, %v364_v50  ;;  %v1561_v50 = vpop.permute.xlu0 %325 }
 0x249   :  { %v411_v63 = vpop.permute.xlu2 %410 }
 0x24a   :  { %1119 = vset.pattern.permute.xlu1 %v1219_v16 }
 0x24b   :  { %1118 = vset.pattern.permute.xlu2 %v1221_v18  ;;  %727 = vperm.xlu1 %1119, %v1466_v28  }
 0x24c   :  { %714 = vperm.xlu2 %1118, %v1466_v28   ;;  %1149 = vset.pattern.permute.xlu0 %v1246_v41 }
 0x24d   :  { %v377_v0 = vpop.permute.xlu1 %376  ;;  %v1569_v57 = vpop.permute.xlu0 %297 }
 0x24e   :  { %v1523_v1 = vsel %vm190_vm1, %v377_v0, %v381_v59 }
 0x253   :  { %1122 = vset.pattern.permute.xlu1 %v1222_v19  ;;  %v1529_v4 = vpop.permute.xlu2 %427  ;;  %v243_v19 = vsub.f32 0.0, %v239_v11 }
 0x254   :  { %1120 = vset.pattern.permute.xlu2 %v1224_v21  ;;  %748 = vperm.xlu1 %1122, %v1466_v28  }
 0x255   :  { %731 = vperm.xlu2 %1120, %v1466_v28   ;;  %v250_v7 = vmul.f32 1.442695, %v243_v19 }
 0x257   :  { %v1531_v5 = vpop.permute.xlu1 %397  ;;  %1166 = vpow2.f32 %v250_v7 }
 0x25c   :  { %1124 = vset.pattern.permute.xlu1 %v1225_v22  ;;  %v449_v13 = vpop.permute.xlu2 %448 }
 0x25d   :  { %1123 = vset.pattern.permute.xlu2 %v1227_v24  ;;  %765 = vperm.xlu1 %1124, %v1466_v28   ;;  %v1167_v24 = vpop.eup %1166 }
 0x25e   :  { %761 = vperm.xlu2 %1123, %v1466_v28  }
 0x260   :  { %v415_v16 = vpop.permute.xlu1 %414 }
 0x261   :  { %v1539_v18 = vsel %vm190_vm1, %v411_v63, %v415_v16 }
 0x265   :  { %307 = vrot.lane.b32.xlu1 %v266_v20, %s1215_s5  ;;  %v466_v21 = vpop.permute.xlu2 %465 }
 0x266   :  { %1125 = vset.pattern.permute.xlu2 %v1230_v27  ;;  %1127 = vset.pattern.permute.xlu1 %v1228_v25  ;;  %v255_v27 = vadd.f32 1.0, %v1167_v24 }
 0x267   :  { %778 = vperm.xlu2 %1125, %v1466_v28  }
 0x268   :  { %1168 = vlog2.f32 %v255_v27 }
 0x26a   :  { %v445_v22 = vpop.permute.xlu1 %444 }
 0x26b   :  { %v1546_v23 = vsel %vm190_vm1, %v445_v22, %v449_v13 }
 0x26d   :  { %795 = vperm.xlu1 %1127, %v1466_v28  }
 0x26e   :  { %v1169_v49 = vpop.eup %1168 }
 0x26f   :  { %1128 = vset.pattern.permute.xlu2 %v1232_v30  ;;  %v496_v43 = vpop.permute.xlu2 %495 }
 0x270   :  { %799 = vperm.xlu2 %1128, %v1466_v28  }
 0x273   :  { %v462_v25 = vpop.permute.xlu1 %461 }
 0x274   :  { %v1553_v48 = vsel %vm190_vm1, %v462_v25, %v466_v21 }
 0x275   :  { %1129 = vset.pattern.permute.xlu1 %v1231_v29  ;;  %v263_v29 = vmul.f32 0.6931472, %v1169_v49 }
 0x276   :  { %812 = vperm.xlu1 %1129, %v1466_v28  }
 0x278   :  { %1130 = vset.pattern.permute.xlu2 %v1234_v34  ;;  %v1563_v51 = vpop.permute.xlu2 %512  ;;  %v267_v34 = vadd.f32 %v263_v29, %v235_v56  ;;  %v232_v56 = vmax.f32 %v1433_v9, 0.0 }
 0x279   :  { %816 = vperm.xlu2 %1130, %v1466_v28  }
 0x27d   :  { %v1559_v30 = vpop.permute.xlu1 %482 }
 0x27e   :  { %1133 = vset.pattern.permute.xlu1 %v1233_v32  ;;  %v1579_v32 = vpop.permute.xlu0 %299 }
 0x27f   :  { %833 = vperm.xlu1 %1133, %v1466_v28  }
 0x281   :  { %1134 = vset.pattern.permute.xlu2 %v1236_v36 }
 0x282   :  { %846 = vperm.xlu2 %1134, %v1466_v28   ;;  %v534_v61 = vpop.permute.xlu2 %533 }
 0x286   :  { %v500_v59 = vpop.permute.xlu1 %499 }
 0x287   :  { %v1572_v60 = vsel %vm190_vm1, %v496_v43, %v500_v59  ;;  %309 = vrot.lane.b32.xlu1 %v267_v34, %s1215_s5 }
 0x288   :  { %1135 = vset.pattern.permute.xlu1 %v1235_v35  ;;  %v1586_v35 = vpop.permute.xlu0 %346 }
 0x28a   :  { %1136 = vset.pattern.permute.xlu2 %v1238_v39 }
 0x28b   :  { %863 = vperm.xlu2 %1136, %v1466_v28   ;;  %v551_v0 = vpop.permute.xlu2 %550 }
 0x28f   :  { %850 = vperm.xlu1 %1135, %v1466_v28  }
 0x290   :  { %v530_v36 = vpop.permute.xlu1 %529  ;;  %v1596_v8 = vpop.permute.xlu0 %393 }
 0x291   :  { %v1582_v63 = vsel %vm190_vm1, %v530_v36, %v534_v61  ;;  %v1648_v36 = vsel %vm190_vm1, %v1397_v52, %v1569_v57  ;;  %v323_v57 = vsel %vm190_vm1, %v1395_v47, %v1483_v37 }
 0x293   :  { %1138 = vset.pattern.permute.xlu2 %v1246_v41 }
 0x294   :  { %601 = vperm.xlu2 %1138, %v1440_v15   ;;  %v581_v6 = vpop.permute.xlu2 %580 }
 0x297   :  { %1137 = vset.pattern.permute.xlu1 %v1247_v2 }
 0x298   :  { %597 = vperm.xlu1 %1137, %v1440_v15   ;;  %v1606_v11 = vpop.permute.xlu0 %431 }
 0x299   :  { %v547_v39 = vpop.permute.xlu1 %546 }
 0x29a   :  { %v1590_v3 = vsel %vm190_vm1, %v547_v39, %v551_v0 }
 0x29c   :  { %1140 = vset.pattern.permute.xlu2 %v1240_v42 }
 0x29d   :  { %884 = vperm.xlu2 %1140, %v1466_v28   ;;  %v1601_v15 = vpop.permute.xlu2 %693 }
 0x2a0   :  { %1139 = vset.pattern.permute.xlu1 %v1237_v38  ;;  %v1620_v16 = vpop.permute.xlu0 %478 }
 0x2a1   :  { %880 = vperm.xlu1 %1139, %v1466_v28  }
 0x2a2   :  { %v1598_v10 = vpop.permute.xlu1 %567 }
 0x2a5   :  { %1143 = vset.pattern.permute.xlu2 %v1229_v26  ;;  %v236_v26 = vand.u32 2147483647, %v1433_v9 }
 0x2a6   :  { %914 = vperm.xlu2 %1143, %v1466_v28   ;;  %v1614_v12 = vpop.permute.xlu2 %714 }
 0x2a9   :  { %1142 = vset.pattern.permute.xlu1 %v1243_v46  ;;  %v240_v46 = vsub.f32 0.0, %v236_v26 }
 0x2aa   :  { %901 = vperm.xlu1 %1142, %v1466_v28  }
 0x2ab   :  { %v585_v42 = vpop.permute.xlu1 %584  ;;  %v244_v17 = vmul.f32 1.442695, %v240_v46 }
 0x2ac   :  { %v1609_v38 = vsel %vm190_vm1, %v581_v6, %v585_v42 }
 0x2ad   :  { %1170 = vpow2.f32 %v244_v17 }
 0x2ae   :  { %1145 = vset.pattern.permute.xlu2 %v1245_v54 }
 0x2af   :  { %931 = vperm.xlu2 %1145, %v1466_v28   ;;  %v1624_v54 = vpop.permute.xlu2 %731 }
 0x2b2   :  { %1144 = vset.pattern.permute.xlu1 %v1242_v45  ;;  %v1629_v45 = vpop.permute.xlu0 %563 }
 0x2b3   :  { %918 = vperm.xlu1 %1144, %v1466_v28   ;;  %v1171_v20 = vpop.eup %1170 }
 0x2b4   :  { %v1618_v13 = vpop.permute.xlu1 %710  ;;  %v252_v21 = vadd.f32 1.0, %v1171_v20  ;;  %v349_v20 = vsel %vm190_vm1, %v1496_v44, %v1586_v35 }
 0x2b6   :  { %1172 = vlog2.f32 %v252_v21 }
 0x2b7   :  { %1148 = vset.pattern.permute.xlu2 %v1246_v41  ;;  %v237_v41 = vand.u32 2147483647, %v1438_v14 }
 0x2b8   :  { %952 = vperm.xlu2 %1148, %v1466_v28   ;;  %v1631_v7 = vpop.permute.xlu2 %761 }
 0x2ba   :  { %v1635_v24 = vpop.permute.xlu0 %697 }
 0x2bb   :  { %1147 = vset.pattern.permute.xlu1 %v1247_v2  ;;  %v1655_v2 = vld [vmem:[%s1973_s1 + $0x190] sm:$0xff] }
 0x2bc   :  { %948 = vperm.xlu1 %1147, %v1466_v28   ;;  %v1173_v27 = vpop.eup %1172  ;;  %v241_v28 = vsub.f32 0.0, %v237_v41 }
 0x2bd   :  { %v1627_v19 = vpop.permute.xlu1 %727  ;;  %v257_v49 = vmul.f32 0.6931472, %v1173_v27 }
 0x2be   :  { %v246_v34 = vmul.f32 1.442695, %v241_v28 }
 0x2bf   :  { %v264_v59 = vadd.f32 %v257_v49, %v232_v56  ;;  %v400_v49 = vsel %vm190_vm1, %v1596_v8, %v1531_v5  ;;  %v434_v5 = vsel %vm190_vm1, %v1529_v4, %v1606_v11 }
 0x2c0   :  { %1174 = vpow2.f32 %v246_v34 }
 0x2c1   :  { %v1638_v25 = vpop.permute.xlu2 %778 }
 0x2c2   :  { %v1642_v29 = vpop.permute.xlu0 %744 }
 0x2c6   :  { %v1633_v22 = vpop.permute.xlu1 %748  ;;  %v1175_v35 = vpop.eup %1174 }
 0x2ca   :  { %v1650_v0 = vpop.permute.xlu2 %799  ;;  %v1673_v21 = vpop.permute.xlu0 %782 }
 0x2cf   :  { %v1640_v43 = vpop.permute.xlu1 %765 }
 0x2d7   :  { %v308_v61 = vpop.permute.xlu1 %307 }
 0x2d8   :  { %v1658_v39 = vsel %vm190_vm1, %v264_v59, %v308_v61 }
 0x2d9   :  { %v333_v9 = vmul.f32 %v1658_v39, %v1648_v36  ;;  %v338_v6 = vperm.slane %v1658_v39, 0  ;;  %v356_v42 = vperm.slane %v1658_v39, 1  ;;  %v373_v52 = vperm.slane %v1658_v39, 2 }
 0x2da   :  { %v390_v47 = vperm.slane %v1658_v39, 3 }
 0x2db   :  { %v350_v26 = vmul.f32 %v338_v6, %v1655_v2  ;;  %v367_v46 = vmul.f32 %v356_v42, %v1655_v2  ;;  %v339_v17 = vperm.slane %v333_v9, 0  ;;  %v357_v41 = vperm.slane %v333_v9, 1 }
 0x2dc   :  { %v374_v27 = vperm.slane %v333_v9, 2  ;;  %v391_v28 = vperm.slane %v333_v9, 3  ;;  %v384_v34 = vmul.f32 %v373_v52, %v1655_v2  ;;  %v408_v42 = vperm.slane %v333_v9, 4 }
 0x2dd   :  { %v351_v56 = vmul.f32 1.442695, %v350_v26  ;;  %v354_v37 = vmul.f32 %v349_v20, %v339_v17  ;;  %v371_v59 = vmul.f32 %v1516_v62, %v357_v41  ;;  %v368_v6 = vmul.f32 1.442695, %v367_v46  ;;  %v1698_v17 = vpop.permute.xlu2 %816 }
 0x2de   :  { %v1682_v61 = vmul.f32 %v1523_v1, %v374_v27  ;;  %v1684_v44 = vmul.f32 %v400_v49, %v391_v28  ;;  %v425_v33 = vperm.slane %v333_v9, 5  ;;  %v442_v8 = vperm.slane %v333_v9, 6  ;;  %v1715_v27 = vpop.permute.xlu0 %829 }
 0x2df   :  { %1176 = vpow2.f32 %v351_v56  ;;  %v1686_v55 = vpop.permute.xlu1 %795  ;;  %v1691_v52 = vmul.f32 0.5, %v323_v57  ;;  %v1694_v62 = vmul.f32 %v1539_v18, %v408_v42  ;;  %v253_v26 = vadd.f32 1.0, %v1175_v35  ;;  %v63_v18 = vld [vmem:[%s1973_s1 + $0x188] sm:$0xff]  ;;  %v60_v42 = vld [vmem:[%s1973_s1 + $0x170] sm:$0xff] }
 0x2e0   :  { %v1696_v1 = vmul.f32 %v434_v5, %v425_v33  ;;  %v407_v46 = vperm.slane %v1658_v39, 4  ;;  %v1702_v20 = vmul.f32 %v1546_v23, %v442_v8  ;;  %1178 = vpow2.f32 %v368_v6  ;;  %997 = vmatpush.msrb.mxu2 %v63_v18  ;;  %v62_v23 = vld [vmem:[%s1973_s1 + $0x180] sm:$0xff] }
 0x2e1   :  { %v385_v41 = vmul.f32 1.442695, %v384_v34  ;;  %v401_v4 = vmul.f32 %v390_v47, %v1655_v2  ;;  %v459_v11 = vperm.slane %v333_v9, 7  ;;  %1180 = vtanh.f32 %v1691_v52 }
 0x2e2   :  { %1182 = vlog2.f32 %v253_v26  ;;  %998 = vmatpush.msrb.mxu2 %v62_v23  ;;  %v418_v49 = vmul.f32 %v407_v46, %v1655_v2  ;;  %v424_v56 = vperm.slane %v1658_v39, 5  ;;  %v700_v6 = vsel %vm190_vm1, %v1601_v15, %v1635_v24 }
 0x2e3   :  { %v1710_v57 = vmul.f32 %v1553_v48, %v459_v11  ;;  %1184 = vpow2.f32 %v385_v41  ;;  %v402_v9 = vmul.f32 1.442695, %v401_v4  ;;  %v61_v48 = vld [vmem:[%s1973_s1 + $0x178] sm:$0xff]  ;;  %v441_v41 = vperm.slane %v1658_v39, 6  ;;  %v59_v4 = vld [vmem:[%s1973_s1 + $0x168] sm:$0xff] }
 0x2e4   :  { %999 = vmatpush.msrb.mxu2 %v61_v48  ;;  %v419_v46 = vmul.f32 1.442695, %v418_v49  ;;  %v717_v23 = vsel %vm190_vm1, %v1618_v13, %v1614_v12  ;;  %v1751_v12 = vld [vmem:[%s1973_s1 + $0x19a] ss:$0 sm:$0xff] }
 0x2e5   :  { %v1177_v33 = vpop.eup %1176  ;;  %1186 = vpow2.f32 %v402_v9  ;;  %v1735_v15 = vpop.permute.xlu2 %846  ;;  %v58_v9 = vld [vmem:[%s1973_s1 + $0x160] sm:$0xff] }
 0x2e6   :  { %v612_v28 = vmul.f32 0.0, %v1177_v33  ;;  %v1179_v35 = vpop.eup %1178  ;;  %1000 = vmatpush.msrb.mxu2 %v60_v42  ;;  %1188 = vpow2.f32 %v419_v46 }
 0x2e7   :  { %v1181_v26 = vpop.eup %1180 }
 0x2e8   :  { %v614_v47 = vadd.f32 %v612_v28, %v354_v37  ;;  %v1722_v34 = vpop.permute.xlu1 %812  ;;  %v435_v37 = vmul.f32 %v424_v56, %v1655_v2  ;;  %v1183_v11 = vpop.eup %1182  ;;  %1001 = vmatpush.msrb.mxu2 %v59_v4  ;;  %v458_v28 = vperm.slane %v1658_v39, 7  ;;  %v233_v4 = vmax.f32 %v1438_v14, 0.0 }
 0x2e9   :  { %v1185_v33 = vpop.eup %1184  ;;  %v259_v13 = vmul.f32 0.6931472, %v1183_v11  ;;  %v517_v39 = vpop.permute.xlu0 %516 }
 0x2ea   :  { %v617_v5 = vmul.f32 %v1179_v35, %v614_v47  ;;  %v702_v8 = vmul.f32 %v700_v6, %v614_v47  ;;  %1002 = vmatpush.msrb.mxu2 %v58_v9  ;;  %v991_v47 = vadd.f32 1.0, %v1181_v26  ;;  %v452_v35 = vmul.f32 %v441_v41, %v1655_v2  ;;  %v57_v6 = vld [vmem:[%s1973_s1 + $0x158] sm:$0xff]  ;;  %v56_v41 = vld [vmem:[%s1973_s1 + $0x150] sm:$0xff] }
 0x2eb   :  { %v734_v26 = vsel %vm190_vm1, %v1627_v19, %v1624_v54  ;;  %v469_v46 = vmul.f32 %v458_v28, %v1655_v2  ;;  %v1767_v54 = vmul.f32 %v1751_v12, %v1648_v36  ;;  %v1772_v19 = vsel %vm190_vm1, %v1403_v58, %v1579_v32 }
 0x2ec   :  { %v619_v24 = vadd.f32 %v617_v5, %v371_v59  ;;  %v703_v18 = vrot.slane %v702_v8, 4  ;;  %v436_v59 = vmul.f32 1.442695, %v435_v37  ;;  %1003 = vmatpush.msrb.mxu2 %v57_v6  ;;  %v265_v14 = vadd.f32 %v259_v13, %v233_v4 }
 0x2ed   :  { %v1783_v36 = vsel %vm190_vm1, %v1629_v45, %v1598_v10  ;;  %v751_v58 = vsel %vm190_vm1, %v1642_v29, %v1633_v22  ;;  %v55_v10 = vld [vmem:[%s1973_s1 + $0x148] sm:$0xff] }
 0x2ee   :  { %v622_v49 = vmul.f32 %v1185_v33, %v619_v24  ;;  %v719_v56 = vmul.f32 %v717_v23, %v619_v24  ;;  %v704_v48 = vadd.f32 %v703_v18, %v702_v8  ;;  %v1187_v8 = vpop.eup %1186  ;;  %1004 = vmatpush.msrb.mxu2 %v56_v41  ;;  %1190 = vpow2.f32 %v436_v59 }
 0x2ef   :  { %v453_v33 = vmul.f32 1.442695, %v452_v35  ;;  %v1189_v9 = vpop.eup %1188 }
 0x2f0   :  { %v624_v42 = vadd.f32 %v622_v49, %v1682_v61  ;;  %v720_v5 = vrot.slane %v719_v56, 4  ;;  %v705_v18 = vrot.slane %v704_v48, 2  ;;  %v1763_v61 = vmul.f32 %v991_v47, %v1691_v52  ;;  %1005 = vmatpush.msrb.mxu2 %v55_v10 }
 0x2f1   :  { %v834_v37 = vpop.permute.xlu1 %833  ;;  %v485_v52 = vsel %vm190_vm1, %v1620_v16, %v1559_v30  ;;  %v519_v49 = vsel %vm190_vm1, %v1563_v51, %v517_v39  ;;  %v785_v30 = vsel %vm190_vm1, %v1638_v25, %v1673_v21  ;;  %v768_v51 = vsel %vm190_vm1, %v1631_v7, %v1640_v43  ;;  %v868_v45 = vpop.permute.xlu0 %867 }
 0x2f2   :  { %v627_v11 = vmul.f32 %v1187_v8, %v624_v42  ;;  %v736_v24 = vmul.f32 %v734_v26, %v624_v42  ;;  %v721_v23 = vadd.f32 %v720_v5, %v719_v56  ;;  %v470_v56 = vmul.f32 1.442695, %v469_v46 }
 0x2f3   :  { %v1788_v59 = vadd.f32 %v705_v18, %v704_v48  ;;  %1192 = vpow2.f32 %v453_v33  ;;  %v802_v48 = vsel %vm190_vm1, %v1686_v55, %v1650_v0  ;;  %v1811_v43 = vsel %vm190_vm1, %v1722_v34, %v1698_v17  ;;  %v54_v18 = vld [vmem:[%s1973_s1 + $0x140] sm:$0xff] }
 0x2f4   :  { %v629_v28 = vadd.f32 %v627_v11, %v1684_v44  ;;  %v722_v47 = vrot.slane %v721_v23, 2  ;;  %v864_v44 = vpop.permute.xlu2 %863  ;;  %v737_v29 = vrot.slane %v736_v24, 4  ;;  %v1191_v25 = vpop.eup %1190  ;;  %1194 = vpow2.f32 %v470_v56  ;;  %1006 = vmatpush.msrb.mxu2 %v54_v18 }
 0x2f5   :  { %v1806_v7 = vsel %vm190_vm1, %v864_v44, %v868_v45  ;;  %v1815_v21 = vsel %vm190_vm1, %v1715_v27, %v834_v37  ;;  %v707_v13 = vrot.slane %v1788_v59, 1  ;;  %v52_v45 = vld [vmem:[%s1973_s1 + $0x130] sm:$0xff] }
 0x2f6   :  { %v632_v32 = vmul.f32 %v1189_v9, %v629_v28  ;;  %v753_v16 = vmul.f32 %v751_v58, %v629_v28  ;;  %v1803_v35 = vadd.f32 %v722_v47, %v721_v23  ;;  %v1828_v5 = vadd.f32 %v737_v29, %v736_v24  ;;  %v53_v58 = vld [vmem:[%s1973_s1 + $0x138] sm:$0xff] }
 0x2f7   :  { %1007 = vmatpush.msrb.mxu2 %v53_v58 }
 0x2f8   :  { %v634_v22 = vadd.f32 %v632_v32, %v1694_v62  ;;  %v754_v39 = vrot.slane %v753_v16, 4  ;;  %v724_v26 = vrot.slane %v1803_v35, 1 }
 0x2f9   :  { %v310_v62 = vpop.permute.xlu1 %309  ;;  %v1193_v46 = vpop.eup %1192  ;;  %1008 = vmatpush.msrb.mxu2 %v52_v45 }
 0x2fa   :  { %v637_v6 = vmul.f32 %v1191_v25, %v634_v22  ;;  %v770_v55 = vmul.f32 %v768_v51, %v634_v22  ;;  %v1818_v0 = vsel %vm190_vm1, %v265_v14, %v310_v62  ;;  %v1195_v14 = vpop.eup %1194  ;;  %v1840_v28 = vadd.f32 %v754_v39, %v753_v16 }
 0x2fb   :  { %v1823_v42 = vmul.f32 %v1818_v0, %v1772_v19  ;;  %v475_v17 = vperm.slane %v1818_v0, 0  ;;  %v492_v34 = vperm.slane %v1818_v0, 1  ;;  %v509_v8 = vperm.slane %v1818_v0, 2 }
 0x2fc   :  { %v639_v27 = vadd.f32 %v637_v6, %v1696_v1  ;;  %v771_v24 = vrot.slane %v770_v55, 4  ;;  %v526_v16 = vperm.slane %v1818_v0, 3  ;;  %v1859_v25 = vpop.permute.xlu2 %601  ;;  %v708_v62 = vadd.f32 %v707_v13, %v1788_v59 }
 0x2fd   :  { %v476_v37 = vperm.slane %v1823_v42, 0  ;;  %v486_v41 = vmul.f32 %v475_v17, %v1655_v2  ;;  %v493_v4 = vperm.slane %v1823_v42, 1  ;;  %v503_v11 = vmul.f32 %v492_v34, %v1655_v2  ;;  %v51_v17 = vld [vmem:[%s1973_s1 + $0x128] sm:$0xff] }
 0x2fe   :  { %v642_v1 = vmul.f32 %v1193_v46, %v639_v27  ;;  %v787_v33 = vmul.f32 %v785_v30, %v639_v27  ;;  %v510_v23 = vperm.slane %v1823_v42, 2  ;;  %v520_v30 = vmul.f32 %v509_v8, %v1655_v2  ;;  %1009 = vmatpush.msrb.mxu2 %v51_v17  ;;  %v50_v46 = vld [vmem:[%s1973_s1 + $0x120] sm:$0xff] }
 0x2ff   :  { %v487_v9 = vmul.f32 1.442695, %v486_v41  ;;  %v490_v56 = vmul.f32 %v485_v52, %v476_v37  ;;  %v1843_v47 = vmul.f32 %v1572_v60, %v493_v4  ;;  %v504_v51 = vmul.f32 1.442695, %v503_v11 }
 0x300   :  { %v644_v32 = vadd.f32 %v642_v1, %v1702_v20  ;;  %v788_v44 = vrot.slane %v787_v33, 4  ;;  %v1850_v10 = vmul.f32 %v519_v49, %v510_v23  ;;  %v527_v52 = vperm.slane %v1823_v42, 3  ;;  %1010 = vmatpush.msrb.mxu2 %v50_v46 }
 0x301   :  { %1196 = vpow2.f32 %v487_v9  ;;  %v1854_v60 = vpop.permute.xlu1 %850  ;;  %v772_v22 = vadd.f32 %v771_v24, %v770_v55  ;;  %v543_v6 = vperm.slane %v1818_v0, 4  ;;  %v739_v34 = vrot.slane %v1828_v5, 2  ;;  %v49_v24 = vld [vmem:[%s1973_s1 + $0x118] sm:$0xff] }
 0x302   :  { %v804_v20 = vmul.f32 %v802_v48, %v644_v32  ;;  %v647_v29 = vmul.f32 %v1195_v14, %v644_v32  ;;  %v789_v49 = vadd.f32 %v788_v44, %v787_v33  ;;  %v1864_v39 = vmul.f32 %v1582_v63, %v527_v52  ;;  %1011 = vmatpush.msrb.mxu2 %v49_v24 }
 0x303   :  { %v521_v27 = vmul.f32 1.442695, %v520_v30  ;;  %v725_v8 = vadd.f32 %v724_v26, %v1803_v35  ;;  %v756_v59 = vrot.slane %v1840_v28, 2  ;;  %1198 = vpow2.f32 %v504_v51 }
 0x304   :  { %v805_v55 = vrot.slane %v804_v20, 4  ;;  %v649_v48 = vadd.f32 %v647_v29, %v1710_v57  ;;  %v537_v13 = vmul.f32 %v526_v16, %v1655_v2  ;;  %v544_v63 = vperm.slane %v1823_v42, 4 }
 0x305   :  { %v773_v37 = vrot.slane %v772_v22, 2  ;;  %v1880_v57 = vsel %vm964_vm2, %v708_v62, %v725_v8  ;;  %v790_v26 = vrot.slane %v789_v49, 2  ;;  %v554_v11 = vmul.f32 %v543_v6, %v1655_v2 }
 0x306   :  { %v806_v41 = vadd.f32 %v805_v55, %v804_v20  ;;  %v821_v4 = vmul.f32 %v1811_v43, %v649_v48  ;;  %v1884_v18 = vmul.f32 %v1590_v3, %v544_v63  ;;  %v560_v1 = vperm.slane %v1818_v0, 5  ;;  %v48_v3 = vld [vmem:[%s1973_s1 + $0x110] sm:$0xff] }
 0x307   :  { %v1197_v35 = vpop.eup %1196  ;;  %1200 = vpow2.f32 %v521_v27  ;;  %v538_v14 = vmul.f32 1.442695, %v537_v13  ;;  %v561_v9 = vperm.slane %v1823_v42, 5  ;;  %v577_v32 = vperm.slane %v1818_v0, 6  ;;  %1012 = vmatpush.msrb.mxu2 %v48_v3 }
 0x308   :  { %v807_v33 = vrot.slane %v806_v41, 2  ;;  %v822_v23 = vrot.slane %v821_v4, 4  ;;  %v652_v43 = vmul.f32 %v1197_v35, %v649_v48  ;;  %v571_v58 = vmul.f32 %v560_v1, %v1655_v2  ;;  %v885_v48 = vpop.permute.xlu2 %884 }
 0x309   :  { %v578_v16 = vperm.slane %v1823_v42, 6  ;;  %v1199_v45 = vpop.eup %1198  ;;  %v791_v20 = vadd.f32 %v790_v26, %v789_v49  ;;  %v555_v29 = vmul.f32 1.442695, %v554_v11  ;;  %v1900_v62 = vmul.f32 %v1783_v36, %v561_v9 }
 0x30a   :  { %v808_v44 = vadd.f32 %v807_v33, %v806_v41  ;;  %v823_v51 = vadd.f32 %v822_v23, %v821_v4  ;;  %v654_v30 = vadd.f32 %v652_v43, %v490_v56  ;;  %v1897_v52 = vpop.permute.xlu1 %597  ;;  %v588_v6 = vmul.f32 %v577_v32, %v1655_v2 }
 0x30b   :  { %v774_v17 = vadd.f32 %v773_v37, %v772_v22  ;;  %1202 = vpow2.f32 %v538_v14  ;;  %v853_v8 = vsel %vm190_vm1, %v1735_v15, %v1854_v60  ;;  %v572_v13 = vmul.f32 1.442695, %v571_v58 }
 0x30c   :  { %v824_v55 = vrot.slane %v823_v51, 2  ;;  %v657_v27 = vmul.f32 %v1199_v45, %v654_v30  ;;  %v838_v56 = vmul.f32 %v1815_v21, %v654_v30  ;;  %v1908_v49 = vmul.f32 %v1609_v38, %v578_v16 }
 0x30d   :  { %v1201_v36 = vpop.eup %1200  ;;  %v809_v63 = vrot.slane %v808_v44, 1  ;;  %v792_v41 = vrot.slane %v791_v20, 1  ;;  %1204 = vpow2.f32 %v555_v29  ;;  %v589_v4 = vmul.f32 1.442695, %v588_v6 }
 0x30e   :  { %v825_v46 = vadd.f32 %v824_v55, %v823_v51  ;;  %v659_v22 = vadd.f32 %v657_v27, %v1843_v47  ;;  %v839_v37 = vrot.slane %v838_v56, 4  ;;  %v740_v21 = vadd.f32 %v739_v34, %v1828_v5 }
 0x30f   :  { %1206 = vpow2.f32 %v572_v13  ;;  %v757_v38 = vadd.f32 %v756_v59, %v1840_v28  ;;  %v775_v60 = vrot.slane %v774_v17, 1  ;;  %v810_v24 = vadd.f32 %v809_v63, %v808_v44 }
 0x310   :  { %v826_v35 = vrot.slane %v825_v46, 1  ;;  %v662_v26 = vmul.f32 %v1201_v36, %v659_v22  ;;  %v840_v11 = vadd.f32 %v839_v37, %v838_v56  ;;  %v855_v1 = vmul.f32 %v853_v8, %v659_v22  ;;  %v1919_v44 = vpop.permute.xlu2 %914  ;;  %v898_v8 = vpop.permute.xlu0 %897 }
 0x311   :  { %v741_v15 = vrot.slane %v740_v21, 1  ;;  %v1203_v43 = vpop.eup %1202  ;;  %1208 = vpow2.f32 %v589_v4  ;;  %v758_v9 = vrot.slane %v757_v38, 1  ;;  %v776_v28 = vadd.f32 %v775_v60, %v774_v17 }
 0x312   :  { %v664_v47 = vadd.f32 %v662_v26, %v1850_v10  ;;  %v841_v33 = vrot.slane %v840_v11, 2  ;;  %v856_v23 = vrot.slane %v855_v1, 4  ;;  %v827_v14 = vadd.f32 %v826_v35, %v825_v46 }
 0x313   :  { %v881_v5 = vpop.permute.xlu1 %880  ;;  %v742_v34 = vadd.f32 %v741_v15, %v740_v21  ;;  %v1205_v30 = vpop.eup %1204  ;;  %v759_v16 = vadd.f32 %v758_v9, %v757_v38  ;;  %v793_v59 = vadd.f32 %v792_v41, %v791_v20 }
 0x314   :  { %v667_v58 = vmul.f32 %v1203_v43, %v664_v47  ;;  %v842_v32 = vadd.f32 %v841_v33, %v840_v11  ;;  %v872_v3 = vmul.f32 %v1806_v7, %v664_v47  ;;  %v857_v51 = vadd.f32 %v856_v23, %v855_v1 }
 0x315   :  { %v967_v10 = vsel %vm966_vm3, %v1880_v57, %v742_v34  ;;  %v1207_v55 = vpop.eup %1206  ;;  %v887_v56 = vsel %vm190_vm1, %v881_v5, %v885_v48 }
 0x316   :  { %v669_v45 = vadd.f32 %v667_v58, %v1864_v39  ;;  %v873_v29 = vrot.slane %v872_v3, 4  ;;  %v858_v6 = vrot.slane %v857_v51, 2  ;;  %v843_v27 = vrot.slane %v842_v32, 1 }
 0x317   :  { %v969_v7 = vsel %vm968_vm4, %v967_v10, %v759_v16  ;;  %v1209_v57 = vpop.eup %1208  ;;  %v594_v39 = vperm.slane %v1818_v0, 7 }
 0x318   :  { %v874_v17 = vadd.f32 %v873_v29, %v872_v3  ;;  %v859_v20 = vadd.f32 %v858_v6, %v857_v51  ;;  %v672_v13 = vmul.f32 %v1205_v30, %v669_v45  ;;  %v889_v36 = vmul.f32 %v887_v56, %v669_v45  ;;  %v932_v9 = vpop.permute.xlu2 %931 }
 0x319   :  { %v971_v63 = vsel %vm970_vm5, %v969_v7, %v776_v28  ;;  %v844_v41 = vadd.f32 %v843_v27, %v842_v32  ;;  %v605_v35 = vmul.f32 %v594_v39, %v1655_v2  ;;  %v604_v51 = vsel %vm190_vm1, %v1897_v52, %v1859_v25 }
 0x31a   :  { %v875_v46 = vrot.slane %v874_v17, 2  ;;  %v860_v22 = vrot.slane %v859_v20, 1  ;;  %v674_v37 = vadd.f32 %v672_v13, %v1884_v18  ;;  %v973_v48 = vsel %vm972_vm6, %v971_v63, %v793_v59 }
 0x31b   :  { %v890_v4 = vrot.slane %v889_v36, 4  ;;  %v975_v21 = vsel %vm974_vm7, %v973_v48, %v810_v24  ;;  %v606_v18 = vmul.f32 1.442695, %v605_v35 }
 0x31c   :  { %v876_v26 = vadd.f32 %v875_v46, %v874_v17  ;;  %v861_v11 = vadd.f32 %v860_v22, %v859_v20  ;;  %v677_v1 = vmul.f32 %v1207_v55, %v674_v37  ;;  %v977_v15 = vsel %vm976_vm8, %v975_v21, %v827_v14  ;;  %v902_v38 = vpop.permute.xlu1 %901 }
 0x31d   :  { %v891_v60 = vadd.f32 %v890_v4, %v889_v36  ;;  %v985_v0 = vadd.f32 %v977_v15, %v1767_v54  ;;  %v904_v47 = vsel %vm190_vm1, %v898_v8, %v902_v38  ;;  %1210 = vpow2.f32 %v606_v18  ;;  %v936_v54 = vpop.permute.xlu0 %935 }
 0x31e   :  { %v877_v33 = vrot.slane %v876_v26, 1  ;;  %v978_v23 = vsel %vm964_vm2, %v844_v41, %v861_v11  ;;  %v679_v43 = vadd.f32 %v677_v1, %v1900_v62  ;;  %v906_v24 = vmul.f32 %v904_v47, %v674_v37 }
 0x31f   :  { %v892_v5 = vrot.slane %v891_v60, 2  ;;  %v995_v2 = vmul.f32 %v1763_v61, %v985_v0  ;;  %v938_v16 = vsel %vm190_vm1, %v932_v9, %v936_v54  ;;  %v595_v61 = vperm.slane %v1823_v42, 7  ;;  %v1153_v9 = vld [vmem:[%s1975_s2] ss:$0 sm:$0xff] }
 0x320   :  { %v878_v34 = vadd.f32 %v877_v33, %v876_v26  ;;  %v682_v14 = vmul.f32 %v1209_v57, %v679_v43  ;;  %v907_v58 = vrot.slane %v906_v24, 4  ;;  %v324_v36 = vsel %vm190_vm1, %v1399_v53, %v1490_v40  ;;  %v953_v37 = vpop.permute.xlu2 %952 }
 0x321   :  { %v893_v32 = vadd.f32 %v892_v5, %v891_v60  ;;  %1013 = vmatmul.f32.vlgmr.msrb.gmra.mxu2 %v995_v2  ;;  %v609_v29 = vmul.f32 %v604_v51, %v595_v61  ;;  %v1981_v51 = vld [vmem:[#allocation5_spill] sm:$0xff] }
 0x322   :  { %v684_v3 = vadd.f32 %v682_v14, %v1908_v49  ;;  %v979_v62 = vsel %vm966_vm3, %v978_v23, %v878_v34  ;;  %v908_v30 = vadd.f32 %v907_v58, %v906_v24 }
 0x323   :  { %v894_v28 = vrot.slane %v893_v32, 1  ;;  %v1211_v45 = vpop.eup %1210 }
 0x324   :  { %v940_v59 = vmul.f32 %v938_v16, %v684_v3  ;;  %v909_v10 = vrot.slane %v908_v30, 2  ;;  %v687_v25 = vmul.f32 %v1211_v45, %v684_v3  ;;  %v1980_v3 = vld [vmem:[#allocation6_spill] sm:$0xff] }
 0x325   :  { %v895_v6 = vadd.f32 %v894_v28, %v893_v32  ;;  %v919_v55 = vpop.permute.xlu1 %918  ;;  %v331_v32 = vsel %vm102_vm0, %v1358_v31, %v1561_v50 }
 0x326   :  { %v941_v27 = vrot.slane %v940_v59, 4  ;;  %v910_v49 = vadd.f32 %v909_v10, %v908_v30  ;;  %v921_v56 = vsel %vm190_vm1, %v1919_v44, %v919_v55  ;;  %v689_v20 = vadd.f32 %v687_v25, %v609_v29 }
 0x327   :  { %v980_v52 = vsel %vm968_vm4, %v979_v62, %v895_v6  ;;  %v923_v7 = vmul.f32 %v921_v56, %v679_v43  ;;  %v988_v44 = vmul.f32 0.5, %v324_v36  ;;  %v337_v43 = vmul.f32 %v1751_v12, %v1772_v19 }
 0x328   :  { %v942_v8 = vadd.f32 %v941_v27, %v940_v59  ;;  %v911_v17 = vrot.slane %v910_v49, 1  ;;  %v332_v62 = vsel %vm102_vm0, %v1981_v51, %v1980_v3 }
 0x329   :  { %v924_v42 = vrot.slane %v923_v7, 4  ;;  %1212 = vtanh.f32 %v988_v44 }
 0x32a   :  { %v943_v13 = vrot.slane %v942_v8, 2  ;;  %v912_v57 = vadd.f32 %v911_v17, %v910_v49 }
 0x32b   :  { %v925_v63 = vadd.f32 %v924_v42, %v923_v7 }
 0x32c   :  { %v944_v39 = vadd.f32 %v943_v13, %v942_v8  ;;  %v981_v46 = vsel %vm970_vm5, %v980_v52, %v912_v57 }
 0x32d   :  { %v926_v22 = vrot.slane %v925_v63, 2 }
 0x32e   :  { %v949_v48 = vpop.permute.xlu1 %948  ;;  %v945_v21 = vrot.slane %v944_v39, 1 }
 0x32f   :  { %v927_v41 = vadd.f32 %v926_v22, %v925_v63  ;;  %v955_v4 = vsel %vm190_vm1, %v949_v48, %v953_v37  ;;  %v1213_v0 = vpop.eup %1212 }
 0x330   :  { %v957_v35 = vmul.f32 %v955_v4, %v689_v20  ;;  %v946_v15 = vadd.f32 %v945_v21, %v944_v39  ;;  %v992_v33 = vadd.f32 1.0, %v1213_v0 }
 0x331   :  { %v928_v26 = vrot.slane %v927_v41, 1 }
 0x332   :  { %v958_v11 = vrot.slane %v957_v35, 4  ;;  %v994_v2 = vmul.f32 %v992_v33, %v988_v44 }
 0x333   :  { %v929_v1 = vadd.f32 %v928_v26, %v927_v41 }
 0x334   :  { %v959_v38 = vadd.f32 %v958_v11, %v957_v35 }
 0x335   :  { %v982_v53 = vsel %vm972_vm6, %v981_v46, %v929_v1 }
 0x336   :  { %v960_v40 = vrot.slane %v959_v38, 2  ;;  %v983_v60 = vsel %vm974_vm7, %v982_v53, %v946_v15 }
 0x338   :  { %v961_v47 = vadd.f32 %v960_v40, %v959_v38 }
 0x33a   :  { %v962_v18 = vrot.slane %v961_v47, 1 }
 0x33c   :  { %v963_v23 = vadd.f32 %v962_v18, %v961_v47 }
 0x33e   :  { %v984_v24 = vsel %vm976_vm8, %v983_v60, %v963_v23 }
 0x33f   :  { %v986_v5 = vadd.f32 %v984_v24, %v337_v43 }
 0x341   :  { %v996_v34 = vmul.f32 %v994_v2, %v986_v5 }
 0x343   :  { %1016 = vmatmul.f32.gmra.mxu2 %v996_v34 }
 0x3a4   :  { %v1014_v14 = vpop.f32.mrf.mxu2 }
 0x3a5   :  { %v1024_v58 = vmul.f32 %v1153_v9, %v1014_v14 }
 0x3a7   :  { %v1026_v54 = vadd.f32 %v1024_v58, %v331_v32 }
 0x3a9   :  { %1028 = vst.msk [vmem:[%s1976_s3] sm:$0xff] %vm190_vm1, %v1026_v54 }
 0x3c6   :  { %v1017_v12 = vpop.f32.mrf.mxu2 }
 0x3c7   :  { %v1025_v19 = vmul.f32 %v1153_v9, %v1017_v12 }
 0x3c9   :  { %v1027_v30 = vadd.f32 %v1025_v19, %v332_v62 }
 0x3cb   :  { %1029 = vst.msk [vmem:[%s1976_s3 + $0x8] sm:$0xff] %vm190_vm1, %v1027_v30 }

</bundles_post_ra>
